<compile_context>
chip_gen: v5e
topology: v5e:2x2
jax: 0.10.0
libtpu: 0.0.40
codegen_flags: <defaults>
</compile_context>

<pallas_src>
import jax
import jax.numpy as jnp
from jax.experimental import pallas as pl
from jax.experimental.pallas import tpu as pltpu


def _round_up(x, m):
    return (x + m - 1) // m * m


def _graph_conv_kernel(feat_ref, w_ref, b_ref, out_ref):
    # feat_ref: (TB, V*Din)   batch tile, flattened (vertex, feature) axis
    # w_ref   : (V*Din, Np)   adj+BN+Linear folded dense weight (resident)
    # b_ref   : (1, Np)       hoisted bias  adj @ b_folded  (resident)
    # out_ref : (TB, Np)      lane-dense output slab (Np multiple of 128)
    h = jnp.dot(feat_ref[...], w_ref[...], preferred_element_type=jnp.float32)
    out_ref[...] = jnp.maximum(h + b_ref[...], 0.0).astype(out_ref.dtype)


def graph_conv_block(feat, lin_w, lin_b, bn_gamma, bn_beta, bn_mean, bn_var,
                     adj, *, eps=1e-5):
    """Pallas implementation of GraphConvBlock.forward (inference-mode BN).

    feat   : (B, V, Din) float
    lin_w  : (V, Dout, Din)  per-vertex nn.Linear weight (PyTorch layout)
    lin_b  : (V, Dout)       per-vertex nn.Linear bias
    bn_*   : (V, Dout)       per-vertex BatchNorm1d gamma/beta/running stats
    adj    : (V, V)
    returns (B, V, Dout) float32
    """
    feat = jnp.asarray(feat, jnp.float32)
    lin_w = jnp.asarray(lin_w, jnp.float32)
    lin_b = jnp.asarray(lin_b, jnp.float32)
    bn_gamma = jnp.asarray(bn_gamma, jnp.float32)
    bn_beta = jnp.asarray(bn_beta, jnp.float32)
    bn_mean = jnp.asarray(bn_mean, jnp.float32)
    bn_var = jnp.asarray(bn_var, jnp.float32)
    adj = jnp.asarray(adj, jnp.float32)

    B, V, Din = feat.shape
    Dout = lin_w.shape[1]
    K = V * Din
    N = V * Dout
    Np = _round_up(N, 128)          # lane-dense output -> unmasked stores

    # ---- batch-independent folding (wrapper side; cache in real use) -------
    # eval-mode BN folded into each vertex's Linear
    scale = bn_gamma / jnp.sqrt(bn_var + eps)                        # (V, Dout)
    w_f = jnp.transpose(lin_w, (0, 2, 1)) * scale[:, None, :]        # (V, Din, Dout)
    b_f = (lin_b - bn_mean) * scale + bn_beta                        # (V, Dout)
    # adjacency folded into the weight: W_all[(i,k),(j,d)] = adj[j,i] * w_f[i,k,d]
    # (small skeleton graph: K x N = (V*Din) x (V*Dout) is only a few MB)
    w_all = jnp.einsum('ji,ikd->ikjd', adj, w_f).reshape(K, N)       # (K, N)
    b_all = (adj @ b_f).reshape(1, N)                                # hoisted adj @ bias
    if Np != N:
        w_all = jnp.pad(w_all, ((0, 0), (0, Np - N)))
        b_all = jnp.pad(b_all, ((0, 0), (0, Np - N)))

    # ---- batch tiling: large tiles, zero-padded tail ------------------------
    TB = min(256, _round_up(B, 8))
    Bp = _round_up(B, TB)
    feat_flat = feat.reshape(B, K)           # contiguous reshape; no transpose
    if Bp != B:
        feat_flat = jnp.pad(feat_flat, ((0, Bp - B), (0, 0)))

    grid = (Bp // TB,)

    out_p = pl.pallas_call(
        _graph_conv_kernel,
        out_shape=jax.ShapeDtypeStruct((Bp, Np), jnp.float32),
        grid_spec=pltpu.PrefetchScalarGridSpec(
            num_scalar_prefetch=0,
            grid=grid,
            in_specs=[
                pl.BlockSpec((TB, K), lambda b: (b, 0)),   # feat batch tile
                pl.BlockSpec((K, Np), lambda b: (0, 0)),   # folded weight (resident)
                pl.BlockSpec((1, Np), lambda b: (0, 0)),   # hoisted bias (resident)
            ],
            out_specs=pl.BlockSpec((TB, Np), lambda b: (b, 0)),
        ),
        compiler_params=pltpu.CompilerParams(
            dimension_semantics=("parallel",)),
    )(feat_flat, w_all, b_all)

    return out_p[:B, :N].reshape(B, V, Dout)


def graph_conv_ref(feat, lin_w, lin_b, bn_gamma, bn_beta, bn_mean, bn_var,
                   adj, eps=1e-5):
    """Pure-JAX reference matching the PyTorch forward (eval-mode BN)."""
    h = jnp.einsum('bvk,vdk->bvd', feat, lin_w) + lin_b[None]
    h = (h - bn_mean[None]) / jnp.sqrt(bn_var[None] + eps) * bn_gamma[None] + bn_beta[None]
    out = jnp.einsum('ji,bid->bjd', adj, h)
    return jnp.maximum(out, 0.0)


if __name__ == "__main__":
    # Small shapes consistent with the module: batch=2, vertices=15 (joint graph),
    # dim_in=32, dim_out=64.
    B, V, Din, Dout = 2, 15, 32, 64
    key = jax.random.PRNGKey(0)
    ks = jax.random.split(key, 8)

    feat = jax.random.normal(ks[0], (B, V, Din), jnp.float32)
    lin_w = 0.1 * jax.random.normal(ks[1], (V, Dout, Din), jnp.float32)
    lin_b = 0.1 * jax.random.normal(ks[2], (V, Dout), jnp.float32)
    bn_gamma = 1.0 + 0.1 * jax.random.normal(ks[3], (V, Dout), jnp.float32)
    bn_beta = 0.1 * jax.random.normal(ks[4], (V, Dout), jnp.float32)
    bn_mean = 0.1 * jax.random.normal(ks[5], (V, Dout), jnp.float32)
    bn_var = jax.random.uniform(ks[6], (V, Dout), jnp.float32, 0.5, 1.5)

    # Normalized (A + I) adjacency, like a typical skeleton graph.
    a = (jax.random.uniform(ks[7], (V, V)) > 0.6).astype(jnp.float32)
    a = jnp.maximum(a, a.T) + jnp.eye(V, dtype=jnp.float32)
    adj = a / jnp.sum(a, axis=1, keepdims=True)

    out = graph_conv_block(feat, lin_w, lin_b, bn_gamma, bn_beta, bn_mean,
                           bn_var, adj)
    out = jax.block_until_ready(out)

    ref = graph_conv_ref(feat, lin_w, lin_b, bn_gamma, bn_beta, bn_mean,
                         bn_var, adj)
    assert out.shape == (B, V, Dout)
    err = float(jnp.max(jnp.abs(out - ref)))
    assert jnp.allclose(out, ref, atol=1e-4, rtol=1e-4), f"max abs err {err}"

    print("KERNEL_OK")
</pallas_src>

<mosaic_0001>
module attributes {stable_mosaic.version = 11 : i64} {
  func.func @_graph_conv_kernel(%arg0: i32, %arg1: memref<8x480xf32, #tpu.memory_space<vmem>>, %arg2: memref<480x1024xf32, #tpu.memory_space<vmem>>, %arg3: memref<1x1024xf32, #tpu.memory_space<vmem>>, %arg4: memref<8x1024xf32, #tpu.memory_space<vmem>>) attributes {dimension_semantics = [#tpu.dimension_semantics<parallel>], iteration_bounds = array<i64: 1>, scalar_prefetch = 0 : i64, scratch_operands = 0 : i64, tpu.core_type = #tpu.core_type<tc>, window_params = [{transform_indices = @transform_0, window_bounds = array<i64: 8, 480>}, {pipeline_mode = #tpu.pipeline_mode<synchronous>, transform_indices = @transform_1, window_bounds = array<i64: 480, 1024>}, {pipeline_mode = #tpu.pipeline_mode<synchronous>, transform_indices = @transform_2, window_bounds = array<i64: 1, 1024>}, {transform_indices = @transform_3, window_bounds = array<i64: 8, 1024>}]} {
    %c0 = arith.constant 0 : index
    %c0_0 = arith.constant 0 : index
    %0 = vector.load %arg1[%c0, %c0_0] : memref<8x480xf32, #tpu.memory_space<vmem>>, vector<8x480xf32>
    %c0_1 = arith.constant 0 : index
    %c0_2 = arith.constant 0 : index
    %1 = vector.load %arg2[%c0_1, %c0_2] : memref<480x1024xf32, #tpu.memory_space<vmem>>, vector<480x1024xf32>
    %cst = arith.constant dense<0.000000e+00> : vector<8x1024xf32>
    %2 = tpu.matmul %0, %1, %cst {dimension_numbers = #tpu.dot_dimension_numbers<[1], [0], [0], [1], [0, 0, 1, 1], [], []>} : vector<8x480xf32>, vector<480x1024xf32>, vector<8x1024xf32> -> vector<8x1024xf32>
    %c0_3 = arith.constant 0 : index
    %c0_4 = arith.constant 0 : index
    %3 = vector.load %arg3[%c0_3, %c0_4] : memref<1x1024xf32, #tpu.memory_space<vmem>>, vector<1x1024xf32>
    %4 = vector.broadcast %3 : vector<1x1024xf32> to vector<8x1024xf32>
    %5 = arith.addf %2, %4 : vector<8x1024xf32>
    %cst_5 = arith.constant 0.000000e+00 : f32
    %6 = vector.broadcast %cst_5 : f32 to vector<8x1024xf32>
    %7 = arith.maximumf %5, %6 : vector<8x1024xf32>
    %c0_6 = arith.constant 0 : index
    %c0_7 = arith.constant 0 : index
    %8 = vector.load %arg4[%c0_6, %c0_7] : memref<8x1024xf32, #tpu.memory_space<vmem>>, vector<8x1024xf32>
    tpu.vector_store %arg4[%c0_6, %c0_7], %7 {strides = array<i32>} : memref<8x1024xf32, #tpu.memory_space<vmem>>, vector<8x1024xf32>,
    return
  }
  func.func @transform_0(%arg0: i32) -> (i32, i32) {
    %c0_i32 = arith.constant 0 : i32
    %c0_i32_0 = arith.constant 0 : i32
    return %arg0, %c0_i32 : i32, i32
  }
  func.func @transform_1(%arg0: i32) -> (i32, i32) {
    %c0_i32 = arith.constant 0 : i32
    %c0_i32_0 = arith.constant 0 : i32
    %c0_i32_1 = arith.constant 0 : i32
    return %c0_i32, %c0_i32_0 : i32, i32
  }
  func.func @transform_2(%arg0: i32) -> (i32, i32) {
    %c0_i32 = arith.constant 0 : i32
    %c0_i32_0 = arith.constant 0 : i32
    %c0_i32_1 = arith.constant 0 : i32
    return %c0_i32, %c0_i32_0 : i32, i32
  }
  func.func @transform_3(%arg0: i32) -> (i32, i32) {
    %c0_i32 = arith.constant 0 : i32
    %c0_i32_0 = arith.constant 0 : i32
    return %arg0, %c0_i32 : i32, i32
  }
}

</mosaic_0001>

<bundles_post_ra>
// kernel: tpu_custom_call.1
= control target key start
LH: loop header
LB: loop body
LE: loop exit
PB: predicated region body
PF: predicated region fallthrough
CT: control target
= control target key end

     0   :  { %8 = vsyncpa [#allocation3], 0  ;;  %s1462_s0 = inlined_call_operand.hbm [shape: f32[8,480], index: 0, kind: input, shape index: {}]   ;;  %s1463_s1 = inlined_call_operand.hbm [shape: f32[480,1024], index: 1, kind: input, shape index: {}]   ;;  %s1464_s2 = inlined_call_operand.hbm [shape: f32[1,1024], index: 2, kind: input, shape index: {}]   ;;  %s1465_s3 = inlined_call_operand.hbm [shape: f32[8,1024], index: 3, kind: output, shape index: {}]  }
   0x1   :  { %9 = vsyncpa [#allocation6], 0  ;;  %s26_s14 = sshll.u32 %s1463_s1, 4  ;;  %s27_s14 = int_to_ptr.hbm [resolvable:$true] %s26_s14 }
   0x2   :  { %10 = vsyncpa [#allocation4], 0  ;;  %s1358_s15 = smov [#allocation5]   ;;  %s16_s19 = sshll.u32 %s1462_s0, 4  ;;  %s17_s19 = int_to_ptr.hbm [resolvable:$true] %s16_s19 }
   0x3   :  { %s28_s16 = sshll.u32 %s1358_s15, 4  ;;  %s1359_s20 = smov 1024   ;;  %s29_s16 = int_to_ptr.vmem [resolvable:$true] %s28_s16 }
   0x4   :  { %s1360_s21 = smov 64   ;;  %s1361_s22 = smov [#allocation2]  }
   0x5   :  { %34 = dma.hbm_to_vmem [thread:$0]  %s27_s14, 61440, %s29_s16, [#allocation6], %s1359_s20, %s1359_s20, %s1360_s21  }
   0x6   :  { %s18_s23 = sshll.u32 %s1361_s22, 4  ;;  %s40_s26 = sshll.u32 %s1464_s2, 4  ;;  %s19_s23 = int_to_ptr.vmem [resolvable:$true] %s18_s23  ;;  %s41_s26 = int_to_ptr.hbm [resolvable:$true] %s40_s26 }
   0x7   :  { %21 = dma.hbm_to_vmem [thread:$0]  %s17_s19, 512, %s19_s23, [#allocation3]  }
   0x8   :  { %s1362_s1 = smov [#allocation7]  }
   0x9   :  { %s42_s27 = sshll.u32 %s1362_s1, 4  ;;  %s43_s27 = int_to_ptr.vmem [resolvable:$true] %s42_s27 }
   0xa   :  { %45 = dma.hbm_to_vmem [thread:$0]  %s41_s26, 128, %s43_s27, [#allocation6]  }
   0xb   :  { %1352 = dma.done.wait [#allocation3], 512  }
   0xc   :  { %1353 = vsyncadd [#allocation3], 4294966784 }
   0xd   :  { %1354 = dma.done.wait [#allocation6], 61568  }
   0xe   :  { %1355 = vsyncadd [#allocation6], 4294905728  ;;  %v438_v0 = vld [vmem:[#allocation5 + $0xbc0] sm:$0xff]  ;;  %v183_v44 = vld [vmem:[#allocation5 + $0x3c8] sm:$0xff]  ;;  %vm560_vm0 = vcmask 785408   ;;  %s1363_s0 = smov [#allocation8]  }
   0xf   :  { %v430_v1 = vld [vmem:[#allocation5 + $0xb80] sm:$0xff]  ;;  %604 = vmatpush.msra.mxu2 %v438_v0  ;;  %v175_v48 = vld [vmem:[#allocation5 + $0x388] sm:$0xff]  ;;  %s1225_s2 = sshll.u32 %s1363_s0, 4  ;;  %s1227_s30 = sshll.u32 %s1465_s3, 4  ;;  %s1226_s2 = int_to_ptr.vmem [resolvable:$true] %s1225_s2  ;;  %s1228_s30 = int_to_ptr.hbm [resolvable:$true] %s1227_s30 }
  0x10   :  { %v534_v2 = vld [vmem:[#allocation5 + $0xec0] sm:$0xff]  ;;  %v167_v52 = vld [vmem:[#allocation5 + $0x348] sm:$0xff] }
  0x11   :  { %628 = vmatpush.msra.mxu3 %v534_v2  ;;  %v310_v3 = vld [vmem:[#allocation5 + $0x7c0] sm:$0xff]  ;;  %605 = vmatpush.msra.mxu2 %v430_v1  ;;  %v159_v56 = vld [vmem:[#allocation5 + $0x308] sm:$0xff] }
  0x12   :  { %v526_v4 = vld [vmem:[#allocation5 + $0xe80] sm:$0xff]  ;;  %584 = vmatpush.msra.mxu1 %v310_v3  ;;  %v535_v60 = vld [vmem:[#allocation5 + $0xec8] sm:$0xff] }
  0x13   :  { %v422_v5 = vld [vmem:[#allocation5 + $0xb40] sm:$0xff]  ;;  %629 = vmatpush.msra.mxu3 %v526_v4  ;;  %v151_v61 = vld [vmem:[#allocation5 + $0x2c8] sm:$0xff] }
  0x14   :  { %v302_v6 = vld [vmem:[#allocation5 + $0x780] sm:$0xff]  ;;  %606 = vmatpush.msra.mxu2 %v422_v5  ;;  %v527_v0 = vld [vmem:[#allocation5 + $0xe88] sm:$0xff] }
  0x15   :  { %v518_v7 = vld [vmem:[#allocation5 + $0xe40] sm:$0xff]  ;;  %585 = vmatpush.msra.mxu1 %v302_v6  ;;  %v143_v1 = vld [vmem:[#allocation5 + $0x288] sm:$0xff] }
  0x16   :  { %v294_v8 = vld [vmem:[#allocation5 + $0x740] sm:$0xff]  ;;  %630 = vmatpush.msra.mxu3 %v518_v7  ;;  %v439_v2 = vld [vmem:[#allocation5 + $0xbc8] sm:$0xff] }
  0x17   :  { %v414_v9 = vld [vmem:[#allocation5 + $0xb00] sm:$0xff]  ;;  %586 = vmatpush.msra.mxu1 %v294_v8  ;;  %v519_v4 = vld [vmem:[#allocation5 + $0xe48] sm:$0xff] }
  0x18   :  { %v510_v10 = vld [vmem:[#allocation5 + $0xe00] sm:$0xff]  ;;  %607 = vmatpush.msra.mxu2 %v414_v9  ;;  %v135_v5 = vld [vmem:[#allocation5 + $0x248] sm:$0xff] }
  0x19   :  { %v182_v11 = vld [vmem:[#allocation5 + $0x3c0] sm:$0xff]  ;;  %631 = vmatpush.msra.mxu3 %v510_v10  ;;  %v431_v6 = vld [vmem:[#allocation5 + $0xb88] sm:$0xff] }
  0x1a   :  { %v286_v12 = vld [vmem:[#allocation5 + $0x700] sm:$0xff]  ;;  %564 = vmatpush.msra.mxu0 %v182_v11  ;;  %v511_v8 = vld [vmem:[#allocation5 + $0xe08] sm:$0xff] }
  0x1b   :  { %v174_v13 = vld [vmem:[#allocation5 + $0x380] sm:$0xff]  ;;  %587 = vmatpush.msra.mxu1 %v286_v12  ;;  %v127_v9 = vld [vmem:[#allocation5 + $0x208] sm:$0xff] }
  0x1c   :  { %v406_v14 = vld [vmem:[#allocation5 + $0xac0] sm:$0xff]  ;;  %565 = vmatpush.msra.mxu0 %v174_v13  ;;  %v423_v10 = vld [vmem:[#allocation5 + $0xb48] sm:$0xff] }
  0x1d   :  { %v502_v15 = vld [vmem:[#allocation5 + $0xdc0] sm:$0xff]  ;;  %608 = vmatpush.msra.mxu2 %v406_v14  ;;  %v311_v11 = vld [vmem:[#allocation5 + $0x7c8] sm:$0xff] }
  0x1e   :  { %v278_v16 = vld [vmem:[#allocation5 + $0x6c0] sm:$0xff]  ;;  %632 = vmatpush.msra.mxu3 %v502_v15  ;;  %v503_v12 = vld [vmem:[#allocation5 + $0xdc8] sm:$0xff] }
  0x1f   :  { %v166_v17 = vld [vmem:[#allocation5 + $0x340] sm:$0xff]  ;;  %588 = vmatpush.msra.mxu1 %v278_v16  ;;  %v119_v13 = vld [vmem:[#allocation5 + $0x1c8] sm:$0xff] }
  0x20   :  { %v398_v18 = vld [vmem:[#allocation5 + $0xa80] sm:$0xff]  ;;  %566 = vmatpush.msra.mxu0 %v166_v17  ;;  %v415_v14 = vld [vmem:[#allocation5 + $0xb08] sm:$0xff] }
  0x21   :  { %v494_v19 = vld [vmem:[#allocation5 + $0xd80] sm:$0xff]  ;;  %609 = vmatpush.msra.mxu2 %v398_v18  ;;  %v303_v15 = vld [vmem:[#allocation5 + $0x788] sm:$0xff] }
  0x22   :  { %v270_v20 = vld [vmem:[#allocation5 + $0x680] sm:$0xff]  ;;  %633 = vmatpush.msra.mxu3 %v494_v19  ;;  %v495_v16 = vld [vmem:[#allocation5 + $0xd88] sm:$0xff] }
  0x23   :  { %v158_v21 = vld [vmem:[#allocation5 + $0x300] sm:$0xff]  ;;  %589 = vmatpush.msra.mxu1 %v270_v20  ;;  %v111_v17 = vld [vmem:[#allocation5 + $0x188] sm:$0xff] }
  0x24   :  { %v390_v22 = vld [vmem:[#allocation5 + $0xa40] sm:$0xff]  ;;  %567 = vmatpush.msra.mxu0 %v158_v21  ;;  %v407_v18 = vld [vmem:[#allocation5 + $0xac8] sm:$0xff] }
  0x25   :  { %v486_v23 = vld [vmem:[#allocation5 + $0xd40] sm:$0xff]  ;;  %610 = vmatpush.msra.mxu2 %v390_v22  ;;  %v295_v19 = vld [vmem:[#allocation5 + $0x748] sm:$0xff] }
  0x26   :  { %v262_v24 = vld [vmem:[#allocation5 + $0x640] sm:$0xff]  ;;  %634 = vmatpush.msra.mxu3 %v486_v23  ;;  %v487_v20 = vld [vmem:[#allocation5 + $0xd48] sm:$0xff] }
  0x27   :  { %v150_v25 = vld [vmem:[#allocation5 + $0x2c0] sm:$0xff]  ;;  %590 = vmatpush.msra.mxu1 %v262_v24  ;;  %v103_v21 = vld [vmem:[#allocation5 + $0x148] sm:$0xff] }
  0x28   :  { %v382_v26 = vld [vmem:[#allocation5 + $0xa00] sm:$0xff]  ;;  %568 = vmatpush.msra.mxu0 %v150_v25  ;;  %v399_v22 = vld [vmem:[#allocation5 + $0xa88] sm:$0xff] }
  0x29   :  { %v478_v27 = vld [vmem:[#allocation5 + $0xd00] sm:$0xff]  ;;  %611 = vmatpush.msra.mxu2 %v382_v26  ;;  %v287_v23 = vld [vmem:[#allocation5 + $0x708] sm:$0xff] }
  0x2a   :  { %v254_v28 = vld [vmem:[#allocation5 + $0x600] sm:$0xff]  ;;  %635 = vmatpush.msra.mxu3 %v478_v27  ;;  %v479_v24 = vld [vmem:[#allocation5 + $0xd08] sm:$0xff] }
  0x2b   :  { %v142_v29 = vld [vmem:[#allocation5 + $0x280] sm:$0xff]  ;;  %591 = vmatpush.msra.mxu1 %v254_v28  ;;  %v95_v25 = vld [vmem:[#allocation5 + $0x108] sm:$0xff] }
  0x2c   :  { %v374_v30 = vld [vmem:[#allocation5 + $0x9c0] sm:$0xff]  ;;  %569 = vmatpush.msra.mxu0 %v142_v29  ;;  %v391_v26 = vld [vmem:[#allocation5 + $0xa48] sm:$0xff] }
  0x2d   :  { %v470_v31 = vld [vmem:[#allocation5 + $0xcc0] sm:$0xff]  ;;  %612 = vmatpush.msra.mxu2 %v374_v30  ;;  %v279_v27 = vld [vmem:[#allocation5 + $0x6c8] sm:$0xff] }
  0x2e   :  { %v246_v32 = vld [vmem:[#allocation5 + $0x5c0] sm:$0xff]  ;;  %636 = vmatpush.msra.mxu3 %v470_v31  ;;  %v471_v28 = vld [vmem:[#allocation5 + $0xcc8] sm:$0xff] }
  0x2f   :  { %v134_v33 = vld [vmem:[#allocation5 + $0x240] sm:$0xff]  ;;  %592 = vmatpush.msra.mxu1 %v246_v32  ;;  %v87_v29 = vld [vmem:[#allocation5 + $0xc8] sm:$0xff] }
  0x30   :  { %v366_v34 = vld [vmem:[#allocation5 + $0x980] sm:$0xff]  ;;  %570 = vmatpush.msra.mxu0 %v134_v33  ;;  %v383_v30 = vld [vmem:[#allocation5 + $0xa08] sm:$0xff] }
  0x31   :  { %v462_v35 = vld [vmem:[#allocation5 + $0xc80] sm:$0xff]  ;;  %613 = vmatpush.msra.mxu2 %v366_v34  ;;  %v271_v31 = vld [vmem:[#allocation5 + $0x688] sm:$0xff] }
  0x32   :  { %v238_v36 = vld [vmem:[#allocation5 + $0x580] sm:$0xff]  ;;  %637 = vmatpush.msra.mxu3 %v462_v35  ;;  %v463_v32 = vld [vmem:[#allocation5 + $0xc88] sm:$0xff] }
  0x33   :  { %v126_v37 = vld [vmem:[#allocation5 + $0x200] sm:$0xff]  ;;  %593 = vmatpush.msra.mxu1 %v238_v36  ;;  %v79_v33 = vld [vmem:[#allocation5 + $0x88] sm:$0xff] }
  0x34   :  { %v358_v38 = vld [vmem:[#allocation5 + $0x940] sm:$0xff]  ;;  %571 = vmatpush.msra.mxu0 %v126_v37  ;;  %v375_v34 = vld [vmem:[#allocation5 + $0x9c8] sm:$0xff] }
  0x35   :  { %v454_v39 = vld [vmem:[#allocation5 + $0xc40] sm:$0xff]  ;;  %614 = vmatpush.msra.mxu2 %v358_v38  ;;  %v263_v35 = vld [vmem:[#allocation5 + $0x648] sm:$0xff] }
  0x36   :  { %v230_v40 = vld [vmem:[#allocation5 + $0x540] sm:$0xff]  ;;  %638 = vmatpush.msra.mxu3 %v454_v39  ;;  %v455_v36 = vld [vmem:[#allocation5 + $0xc48] sm:$0xff]  ;;  %v1393_v39 = vld [vmem:[#allocation2 + $0x10] sm:$0xff] }
  0x37   :  { %v118_v41 = vld [vmem:[#allocation5 + $0x1c0] sm:$0xff]  ;;  %594 = vmatpush.msra.mxu1 %v230_v40  ;;  %v71_v37 = vld [vmem:[#allocation5 + $0x48] sm:$0xff] }
  0x38   :  { %v350_v42 = vld [vmem:[#allocation5 + $0x900] sm:$0xff]  ;;  %572 = vmatpush.msra.mxu0 %v118_v41  ;;  %v367_v38 = vld [vmem:[#allocation5 + $0x988] sm:$0xff] }
  0x39   :  { %v446_v43 = vld [vmem:[#allocation5 + $0xc00] sm:$0xff]  ;;  %615 = vmatpush.msra.mxu2 %v350_v42  ;;  %v447_v40 = vld [vmem:[#allocation5 + $0xc08] sm:$0xff]  ;;  %v184_v42 = vld [vmem:[#allocation5 + $0x3d0] sm:$0xff] }
  0x3a   :  { %v222_v45 = vld [vmem:[#allocation5 + $0x500] sm:$0xff]  ;;  %639 = vmatpush.msra.mxu3 %v446_v43  ;;  %v63_v41 = vld [vmem:[#allocation5 + $0x8] sm:$0xff] }
  0x3b   :  { %v342_v46 = vld [vmem:[#allocation5 + $0x8c0] sm:$0xff]  ;;  %595 = vmatpush.msra.mxu1 %v222_v45  ;;  %v255_v43 = vld [vmem:[#allocation5 + $0x608] sm:$0xff] }
  0x3c   :  { %v110_v47 = vld [vmem:[#allocation5 + $0x180] sm:$0xff]  ;;  %644 = vmatpush.msrb.mxu3 %v183_v44  ;;  %616 = vmatpush.msra.mxu2 %v342_v46  ;;  %v359_v44 = vld [vmem:[#allocation5 + $0x948] sm:$0xff]  ;;  %v1398_v46 = vld [vmem:[#allocation2 + $0x18] sm:$0xff] }
  0x3d   :  { %v214_v49 = vld [vmem:[#allocation5 + $0x4c0] sm:$0xff]  ;;  %573 = vmatpush.msra.mxu0 %v110_v47  ;;  %v176_v47 = vld [vmem:[#allocation5 + $0x390] sm:$0xff]  ;;  %1238 = vmatmul.msk.f32.vlgmr.msra.gmra.mxu3 %vm560_vm0, %v1398_v46 }
  0x3e   :  { %v334_v50 = vld [vmem:[#allocation5 + $0x880] sm:$0xff]  ;;  %645 = vmatpush.msrb.mxu3 %v175_v48  ;;  %596 = vmatpush.msra.mxu1 %v214_v49  ;;  %v312_v48 = vld [vmem:[#allocation5 + $0x7d0] sm:$0xff]  ;;  %v247_v49 = vld [vmem:[#allocation5 + $0x5c8] sm:$0xff] }
  0x3f   :  { %v102_v51 = vld [vmem:[#allocation5 + $0x140] sm:$0xff]  ;;  %617 = vmatpush.msra.mxu2 %v334_v50  ;;  %v351_v50 = vld [vmem:[#allocation5 + $0x908] sm:$0xff] }
  0x40   :  { %v206_v53 = vld [vmem:[#allocation5 + $0x480] sm:$0xff]  ;;  %574 = vmatpush.msra.mxu0 %v102_v51  ;;  %646 = vmatpush.msrb.mxu3 %v167_v52  ;;  %v168_v51 = vld [vmem:[#allocation5 + $0x350] sm:$0xff]  ;;  %v1403_v52 = vld [vmem:[#allocation2 + $0x8] sm:$0xff] }
  0x41   :  { %v326_v54 = vld [vmem:[#allocation5 + $0x840] sm:$0xff]  ;;  %597 = vmatpush.msra.mxu1 %v206_v53  ;;  %v304_v53 = vld [vmem:[#allocation5 + $0x790] sm:$0xff] }
  0x42   :  { %v94_v55 = vld [vmem:[#allocation5 + $0x100] sm:$0xff]  ;;  %618 = vmatpush.msra.mxu2 %v326_v54  ;;  %647 = vmatpush.msrb.mxu3 %v159_v56  ;;  %v239_v54 = vld [vmem:[#allocation5 + $0x588] sm:$0xff]  ;;  %v160_v56 = vld [vmem:[#allocation5 + $0x310] sm:$0xff] }
  0x43   :  { %v198_v57 = vld [vmem:[#allocation5 + $0x440] sm:$0xff]  ;;  %575 = vmatpush.msra.mxu0 %v94_v55  ;;  %v343_v55 = vld [vmem:[#allocation5 + $0x8c8] sm:$0xff] }
  0x44   :  { %v318_v58 = vld [vmem:[#allocation5 + $0x800] sm:$0xff]  ;;  %598 = vmatpush.msra.mxu1 %v198_v57  ;;  %648 = vmatpush.msrb.mxu3 %v151_v61  ;;  %v296_v57 = vld [vmem:[#allocation5 + $0x750] sm:$0xff] }
  0x45   :  { %v86_v59 = vld [vmem:[#allocation5 + $0xc0] sm:$0xff]  ;;  %619 = vmatpush.msra.mxu2 %v318_v58  ;;  %v231_v58 = vld [vmem:[#allocation5 + $0x548] sm:$0xff]  ;;  %v288_v61 = vld [vmem:[#allocation5 + $0x710] sm:$0xff] }
  0x46   :  { %v190_v62 = vld [vmem:[#allocation5 + $0x400] sm:$0xff]  ;;  %576 = vmatpush.msra.mxu0 %v86_v59  ;;  %649 = vmatpush.msrb.mxu3 %v143_v1  ;;  %v335_v59 = vld [vmem:[#allocation5 + $0x888] sm:$0xff]  ;;  %v280_v1 = vld [vmem:[#allocation5 + $0x6d0] sm:$0xff] }
  0x47   :  { %v78_v63 = vld [vmem:[#allocation5 + $0x80] sm:$0xff]  ;;  %708 = vmatpush.msrb.mxu2 %v535_v60  ;;  %599 = vmatpush.msra.mxu1 %v190_v62  ;;  %v152_v60 = vld [vmem:[#allocation5 + $0x2d0] sm:$0xff]  ;;  %v223_v62 = vld [vmem:[#allocation5 + $0x508] sm:$0xff] }
  0x48   :  { %v70_v3 = vld [vmem:[#allocation5 + $0x40] sm:$0xff]  ;;  %577 = vmatpush.msra.mxu0 %v78_v63  ;;  %650 = vmatpush.msrb.mxu3 %v135_v5  ;;  %v327_v63 = vld [vmem:[#allocation5 + $0x848] sm:$0xff]  ;;  %v272_v5 = vld [vmem:[#allocation5 + $0x690] sm:$0xff] }
  0x49   :  { %709 = vmatpush.msrb.mxu2 %v527_v0  ;;  %v62_v7 = vld [vmem:[#allocation5] sm:$0xff]  ;;  %684 = vmatpush.msrb.mxu1 %v439_v2  ;;  %v144_v0 = vld [vmem:[#allocation5 + $0x290] sm:$0xff]  ;;  %v215_v2 = vld [vmem:[#allocation5 + $0x4c8] sm:$0xff] }
  0x4a   :  { %578 = vmatpush.msra.mxu0 %v70_v3  ;;  %651 = vmatpush.msrb.mxu3 %v127_v9  ;;  %v1396_v45 = vld [vmem:[#allocation2] sm:$0xff]  ;;  %v319_v3 = vld [vmem:[#allocation5 + $0x808] sm:$0xff]  ;;  %v264_v9 = vld [vmem:[#allocation5 + $0x650] sm:$0xff] }
  0x4b   :  { %710 = vmatpush.msrb.mxu2 %v519_v4  ;;  %685 = vmatpush.msrb.mxu1 %v431_v6  ;;  %v136_v4 = vld [vmem:[#allocation5 + $0x250] sm:$0xff] }
  0x4c   :  { %579 = vmatpush.msra.mxu0 %v62_v7  ;;  %652 = vmatpush.msrb.mxu3 %v119_v13  ;;  %v536_v6 = vld [vmem:[#allocation5 + $0xed0] sm:$0xff]  ;;  %v207_v7 = vld [vmem:[#allocation5 + $0x488] sm:$0xff] }
  0x4d   :  { %711 = vmatpush.msrb.mxu2 %v511_v8  ;;  %686 = vmatpush.msrb.mxu1 %v423_v10  ;;  %v128_v8 = vld [vmem:[#allocation5 + $0x210] sm:$0xff] }
  0x4e   :  { %664 = vmatpush.msrb.mxu0 %v311_v11  ;;  %653 = vmatpush.msrb.mxu3 %v111_v17  ;;  %v528_v10 = vld [vmem:[#allocation5 + $0xe90] sm:$0xff]  ;;  %v199_v11 = vld [vmem:[#allocation5 + $0x448] sm:$0xff] }
  0x4f   :  { %712 = vmatpush.msrb.mxu2 %v503_v12  ;;  %687 = vmatpush.msrb.mxu1 %v415_v14  ;;  %v120_v12 = vld [vmem:[#allocation5 + $0x1d0] sm:$0xff] }
  0x50   :  { %665 = vmatpush.msrb.mxu0 %v303_v15  ;;  %654 = vmatpush.msrb.mxu3 %v103_v21  ;;  %v256_v13 = vld [vmem:[#allocation5 + $0x610] sm:$0xff]  ;;  %v191_v15 = vld [vmem:[#allocation5 + $0x408] sm:$0xff] }
  0x51   :  { %713 = vmatpush.msrb.mxu2 %v495_v16  ;;  %688 = vmatpush.msrb.mxu1 %v407_v18  ;;  %v520_v14 = vld [vmem:[#allocation5 + $0xe50] sm:$0xff] }
  0x52   :  { %666 = vmatpush.msrb.mxu0 %v295_v19  ;;  %655 = vmatpush.msrb.mxu3 %v95_v25  ;;  %v112_v16 = vld [vmem:[#allocation5 + $0x190] sm:$0xff] }
  0x53   :  { %714 = vmatpush.msrb.mxu2 %v487_v20  ;;  %689 = vmatpush.msrb.mxu1 %v399_v22  ;;  %v248_v17 = vld [vmem:[#allocation5 + $0x5d0] sm:$0xff] }
  0x54   :  { %667 = vmatpush.msrb.mxu0 %v287_v23  ;;  %656 = vmatpush.msrb.mxu3 %v87_v29  ;;  %v440_v18 = vld [vmem:[#allocation5 + $0xbd0] sm:$0xff] }
  0x55   :  { %715 = vmatpush.msrb.mxu2 %v479_v24  ;;  %690 = vmatpush.msrb.mxu1 %v391_v26  ;;  %v512_v19 = vld [vmem:[#allocation5 + $0xe10] sm:$0xff] }
  0x56   :  { %668 = vmatpush.msrb.mxu0 %v279_v27  ;;  %657 = vmatpush.msrb.mxu3 %v79_v33  ;;  %v104_v20 = vld [vmem:[#allocation5 + $0x150] sm:$0xff] }
  0x57   :  { %716 = vmatpush.msrb.mxu2 %v471_v28  ;;  %691 = vmatpush.msrb.mxu1 %v383_v30  ;;  %v240_v21 = vld [vmem:[#allocation5 + $0x590] sm:$0xff] }
  0x58   :  { %669 = vmatpush.msrb.mxu0 %v271_v31  ;;  %658 = vmatpush.msrb.mxu3 %v71_v37  ;;  %v432_v22 = vld [vmem:[#allocation5 + $0xb90] sm:$0xff] }
  0x59   :  { %717 = vmatpush.msrb.mxu2 %v463_v32  ;;  %692 = vmatpush.msrb.mxu1 %v375_v34  ;;  %v504_v23 = vld [vmem:[#allocation5 + $0xdd0] sm:$0xff] }
  0x5a   :  { %670 = vmatpush.msrb.mxu0 %v263_v35  ;;  %620 = vmatmul.f32.vlgmr.msra.gmra.mxu2 %v1393_v39  ;;  %v96_v24 = vld [vmem:[#allocation5 + $0x110] sm:$0xff] }
  0x5b   :  { %718 = vmatpush.msrb.mxu2 %v455_v36  ;;  %693 = vmatpush.msrb.mxu1 %v367_v38  ;;  %v232_v25 = vld [vmem:[#allocation5 + $0x550] sm:$0xff] }
  0x5c   :  { %659 = vmatpush.msrb.mxu3 %v63_v41  ;;  %671 = vmatpush.msrb.mxu0 %v255_v43  ;;  %v424_v26 = vld [vmem:[#allocation5 + $0xb50] sm:$0xff] }
  0x5d   :  { %719 = vmatpush.msrb.mxu2 %v447_v40  ;;  %694 = vmatpush.msrb.mxu1 %v359_v44  ;;  %v496_v27 = vld [vmem:[#allocation5 + $0xd90] sm:$0xff] }
  0x5e   :  { %580 = vmatmul.f32.vlgmr.msra.gmra.mxu0 %v1396_v45  ;;  %744 = vmatpush.msra.mxu3 %v312_v48  ;;  %v88_v28 = vld [vmem:[#allocation5 + $0xd0] sm:$0xff] }
  0x5f   :  { %724 = vmatpush.msra.mxu2 %v184_v42  ;;  %672 = vmatpush.msrb.mxu0 %v247_v49  ;;  %v224_v29 = vld [vmem:[#allocation5 + $0x510] sm:$0xff] }
  0x60   :  { %695 = vmatpush.msrb.mxu1 %v351_v50  ;;  %745 = vmatpush.msra.mxu3 %v304_v53  ;;  %v416_v30 = vld [vmem:[#allocation5 + $0xb10] sm:$0xff]  ;;  %v441_v53 = vld [vmem:[#allocation5 + $0xbd8] sm:$0xff] }
  0x61   :  { %725 = vmatpush.msra.mxu2 %v176_v47  ;;  %600 = vmatmul.f32.vlgmr.msra.gmra.mxu1 %v1403_v52  ;;  %v488_v31 = vld [vmem:[#allocation5 + $0xd50] sm:$0xff]  ;;  %v313_v47 = vld [vmem:[#allocation5 + $0x7d8] sm:$0xff] }
  0x62   :  { %673 = vmatpush.msrb.mxu0 %v239_v54  ;;  %696 = vmatpush.msrb.mxu1 %v343_v55  ;;  %v80_v32 = vld [vmem:[#allocation5 + $0x90] sm:$0xff] }
  0x63   :  { %726 = vmatpush.msra.mxu2 %v168_v51  ;;  %746 = vmatpush.msra.mxu3 %v296_v57  ;;  %v216_v33 = vld [vmem:[#allocation5 + $0x4d0] sm:$0xff]  ;;  %v305_v51 = vld [vmem:[#allocation5 + $0x798] sm:$0xff] }
  0x64   :  { %674 = vmatpush.msrb.mxu0 %v231_v58  ;;  %697 = vmatpush.msrb.mxu1 %v335_v59  ;;  %v408_v34 = vld [vmem:[#allocation5 + $0xad0] sm:$0xff]  ;;  %v433_v57 = vld [vmem:[#allocation5 + $0xb98] sm:$0xff] }
  0x65   :  { %727 = vmatpush.msra.mxu2 %v160_v56  ;;  %747 = vmatpush.msra.mxu3 %v288_v61  ;;  %v480_v35 = vld [vmem:[#allocation5 + $0xd10] sm:$0xff]  ;;  %v297_v56 = vld [vmem:[#allocation5 + $0x758] sm:$0xff] }
  0x66   :  { %675 = vmatpush.msrb.mxu0 %v223_v62  ;;  %698 = vmatpush.msrb.mxu1 %v327_v63  ;;  %v72_v36 = vld [vmem:[#allocation5 + $0x50] sm:$0xff]  ;;  %v185_v58 = vld [vmem:[#allocation5 + $0x3d8] sm:$0xff] }
  0x67   :  { %728 = vmatpush.msra.mxu2 %v152_v60  ;;  %748 = vmatpush.msra.mxu3 %v280_v1  ;;  %v208_v37 = vld [vmem:[#allocation5 + $0x490] sm:$0xff]  ;;  %v289_v60 = vld [vmem:[#allocation5 + $0x718] sm:$0xff] }
  0x68   :  { %676 = vmatpush.msrb.mxu0 %v215_v2  ;;  %699 = vmatpush.msrb.mxu1 %v319_v3  ;;  %v400_v38 = vld [vmem:[#allocation5 + $0xa90] sm:$0xff]  ;;  %v425_v61 = vld [vmem:[#allocation5 + $0xb58] sm:$0xff] }
  0x69   :  { %729 = vmatpush.msra.mxu2 %v144_v0  ;;  %749 = vmatpush.msra.mxu3 %v272_v5  ;;  %v472_v40 = vld [vmem:[#allocation5 + $0xcd0] sm:$0xff]  ;;  %v177_v62 = vld [vmem:[#allocation5 + $0x398] sm:$0xff] }
  0x6a   :  { %788 = vmatpush.msra.mxu1 %v536_v6  ;;  %677 = vmatpush.msrb.mxu0 %v207_v7  ;;  %v64_v41 = vld [vmem:[#allocation5 + $0x10] sm:$0xff]  ;;  %v281_v0 = vld [vmem:[#allocation5 + $0x6d8] sm:$0xff] }
  0x6b   :  { %730 = vmatpush.msra.mxu2 %v136_v4  ;;  %750 = vmatpush.msra.mxu3 %v264_v9  ;;  %v200_v42 = vld [vmem:[#allocation5 + $0x450] sm:$0xff]  ;;  %v417_v1 = vld [vmem:[#allocation5 + $0xb18] sm:$0xff] }
  0x6c   :  { %789 = vmatpush.msra.mxu1 %v528_v10  ;;  %678 = vmatpush.msrb.mxu0 %v199_v11  ;;  %v392_v43 = vld [vmem:[#allocation5 + $0xa50] sm:$0xff]  ;;  %v169_v2 = vld [vmem:[#allocation5 + $0x358] sm:$0xff] }
  0x6d   :  { %731 = vmatpush.msra.mxu2 %v128_v8  ;;  %751 = vmatpush.msra.mxu3 %v256_v13  ;;  %v464_v44 = vld [vmem:[#allocation5 + $0xc90] sm:$0xff]  ;;  %v273_v4 = vld [vmem:[#allocation5 + $0x698] sm:$0xff] }
  0x6e   :  { %790 = vmatpush.msra.mxu1 %v520_v14  ;;  %679 = vmatpush.msrb.mxu0 %v191_v15  ;;  %v192_v48 = vld [vmem:[#allocation5 + $0x410] sm:$0xff]  ;;  %v409_v5 = vld [vmem:[#allocation5 + $0xad8] sm:$0xff] }
  0x6f   :  { %732 = vmatpush.msra.mxu2 %v120_v12  ;;  %752 = vmatpush.msra.mxu3 %v248_v17  ;;  %v384_v49 = vld [vmem:[#allocation5 + $0xa10] sm:$0xff]  ;;  %v161_v6 = vld [vmem:[#allocation5 + $0x318] sm:$0xff] }
  0x70   :  { %764 = vmatpush.msra.mxu0 %v440_v18  ;;  %791 = vmatpush.msra.mxu1 %v512_v19  ;;  %v456_v50 = vld [vmem:[#allocation5 + $0xc50] sm:$0xff]  ;;  %v265_v8 = vld [vmem:[#allocation5 + $0x658] sm:$0xff] }
  0x71   :  { %733 = vmatpush.msra.mxu2 %v112_v16  ;;  %753 = vmatpush.msra.mxu3 %v240_v21  ;;  %v376_v54 = vld [vmem:[#allocation5 + $0x9d0] sm:$0xff]  ;;  %v401_v9 = vld [vmem:[#allocation5 + $0xa98] sm:$0xff] }
  0x72   :  { %765 = vmatpush.msra.mxu0 %v432_v22  ;;  %792 = vmatpush.msra.mxu1 %v504_v23  ;;  %v448_v55 = vld [vmem:[#allocation5 + $0xc10] sm:$0xff]  ;;  %v153_v10 = vld [vmem:[#allocation5 + $0x2d8] sm:$0xff] }
  0x73   :  { %734 = vmatpush.msra.mxu2 %v104_v20  ;;  %754 = vmatpush.msra.mxu3 %v232_v25  ;;  %v368_v59 = vld [vmem:[#allocation5 + $0x990] sm:$0xff]  ;;  %v257_v12 = vld [vmem:[#allocation5 + $0x618] sm:$0xff] }
  0x74   :  { %766 = vmatpush.msra.mxu0 %v424_v26  ;;  %793 = vmatpush.msra.mxu1 %v496_v27  ;;  %v360_v63 = vld [vmem:[#allocation5 + $0x950] sm:$0xff]  ;;  %v393_v13 = vld [vmem:[#allocation5 + $0xa58] sm:$0xff] }
  0x75   :  { %735 = vmatpush.msra.mxu2 %v96_v24  ;;  %755 = vmatpush.msra.mxu3 %v224_v29  ;;  %v352_v3 = vld [vmem:[#allocation5 + $0x910] sm:$0xff]  ;;  %v145_v14 = vld [vmem:[#allocation5 + $0x298] sm:$0xff] }
  0x76   :  { %767 = vmatpush.msra.mxu0 %v416_v30  ;;  %794 = vmatpush.msra.mxu1 %v488_v31  ;;  %v344_v7 = vld [vmem:[#allocation5 + $0x8d0] sm:$0xff]  ;;  %v249_v16 = vld [vmem:[#allocation5 + $0x5d8] sm:$0xff] }
  0x77   :  { %736 = vmatpush.msra.mxu2 %v88_v28  ;;  %660 = vmatmul.f32.vlgmr.msrb.gmra.mxu3 %v1396_v45  ;;  %v336_v11 = vld [vmem:[#allocation5 + $0x890] sm:$0xff]  ;;  %v385_v17 = vld [vmem:[#allocation5 + $0xa18] sm:$0xff] }
  0x78   :  { %756 = vmatpush.msra.mxu3 %v216_v33  ;;  %768 = vmatpush.msra.mxu0 %v408_v34  ;;  %v328_v15 = vld [vmem:[#allocation5 + $0x850] sm:$0xff]  ;;  %v137_v18 = vld [vmem:[#allocation5 + $0x258] sm:$0xff] }
  0x79   :  { %737 = vmatpush.msra.mxu2 %v80_v32  ;;  %795 = vmatpush.msra.mxu1 %v480_v35  ;;  %v320_v19 = vld [vmem:[#allocation5 + $0x810] sm:$0xff]  ;;  %v241_v20 = vld [vmem:[#allocation5 + $0x598] sm:$0xff] }
  0x7a   :  { %757 = vmatpush.msra.mxu3 %v208_v37  ;;  %769 = vmatpush.msra.mxu0 %v400_v38  ;;  %v377_v21 = vld [vmem:[#allocation5 + $0x9d8] sm:$0xff] }
  0x7b   :  { %738 = vmatpush.msra.mxu2 %v72_v36  ;;  %796 = vmatpush.msra.mxu1 %v472_v40  ;;  %v129_v22 = vld [vmem:[#allocation5 + $0x218] sm:$0xff] }
  0x7c   :  { %758 = vmatpush.msra.mxu3 %v200_v42  ;;  %770 = vmatpush.msra.mxu0 %v392_v43  ;;  %v537_v23 = vld [vmem:[#allocation5 + $0xed8] sm:$0xff] }
  0x7d   :  { %739 = vmatpush.msra.mxu2 %v64_v41  ;;  %797 = vmatpush.msra.mxu1 %v464_v44  ;;  %v233_v24 = vld [vmem:[#allocation5 + $0x558] sm:$0xff] }
  0x7e   :  { %1239 = vmatmul.msk.f32.vlgmr.msrb.gmra.mxu2 %vm560_vm0, %v1398_v46  ;;  %759 = vmatpush.msra.mxu3 %v192_v48  ;;  %v369_v25 = vld [vmem:[#allocation5 + $0x998] sm:$0xff] }
  0x7f   :  { %824 = vmatpush.msrb.mxu2 %v313_v47  ;;  %771 = vmatpush.msra.mxu0 %v384_v49  ;;  %v121_v26 = vld [vmem:[#allocation5 + $0x1d8] sm:$0xff] }
  0x80   :  { %798 = vmatpush.msra.mxu1 %v456_v50  ;;  %680 = vmatmul.f32.vlgmr.msrb.gmra.mxu0 %v1403_v52  ;;  %v529_v27 = vld [vmem:[#allocation5 + $0xe98] sm:$0xff] }
  0x81   :  { %825 = vmatpush.msrb.mxu2 %v305_v51  ;;  %844 = vmatpush.msrb.mxu3 %v441_v53  ;;  %v225_v28 = vld [vmem:[#allocation5 + $0x518] sm:$0xff]  ;;  %v442_v51 = vld [vmem:[#allocation5 + $0xbe0] sm:$0xff] }
  0x82   :  { %772 = vmatpush.msra.mxu0 %v376_v54  ;;  %799 = vmatpush.msra.mxu1 %v448_v55  ;;  %v361_v29 = vld [vmem:[#allocation5 + $0x958] sm:$0xff] }
  0x83   :  { %826 = vmatpush.msrb.mxu2 %v297_v56  ;;  %700 = vmatmul.f32.vlgmr.msrb.gmra.mxu1 %v1393_v39  ;;  %v113_v30 = vld [vmem:[#allocation5 + $0x198] sm:$0xff]  ;;  %v434_v56 = vld [vmem:[#allocation5 + $0xba0] sm:$0xff] }
  0x84   :  { %845 = vmatpush.msrb.mxu3 %v433_v57  ;;  %804 = vmatpush.msrb.mxu1 %v185_v58  ;;  %v521_v31 = vld [vmem:[#allocation5 + $0xe58] sm:$0xff]  ;;  %v538_v57 = vld [vmem:[#allocation5 + $0xee0] sm:$0xff] }
  0x85   :  { %773 = vmatpush.msra.mxu0 %v368_v59  ;;  %827 = vmatpush.msrb.mxu2 %v289_v60  ;;  %v353_v32 = vld [vmem:[#allocation5 + $0x918] sm:$0xff]  ;;  %v314_v60 = vld [vmem:[#allocation5 + $0x7e0] sm:$0xff] }
  0x86   :  { %846 = vmatpush.msrb.mxu3 %v425_v61  ;;  %805 = vmatpush.msrb.mxu1 %v177_v62  ;;  %v105_v33 = vld [vmem:[#allocation5 + $0x158] sm:$0xff]  ;;  %v426_v61 = vld [vmem:[#allocation5 + $0xb60] sm:$0xff] }
  0x87   :  { %774 = vmatpush.msra.mxu0 %v360_v63  ;;  %828 = vmatpush.msrb.mxu2 %v281_v0  ;;  %v217_v34 = vld [vmem:[#allocation5 + $0x4d8] sm:$0xff]  ;;  %v530_v62 = vld [vmem:[#allocation5 + $0xea0] sm:$0xff] }
  0x88   :  { %847 = vmatpush.msrb.mxu3 %v417_v1  ;;  %806 = vmatpush.msrb.mxu1 %v169_v2  ;;  %v513_v35 = vld [vmem:[#allocation5 + $0xe18] sm:$0xff]  ;;  %v306_v0 = vld [vmem:[#allocation5 + $0x7a0] sm:$0xff] }
  0x89   :  { %775 = vmatpush.msra.mxu0 %v352_v3  ;;  %829 = vmatpush.msrb.mxu2 %v273_v4  ;;  %v97_v36 = vld [vmem:[#allocation5 + $0x118] sm:$0xff]  ;;  %v418_v1 = vld [vmem:[#allocation5 + $0xb20] sm:$0xff] }
  0x8a   :  { %848 = vmatpush.msrb.mxu3 %v409_v5  ;;  %807 = vmatpush.msrb.mxu1 %v161_v6  ;;  %v209_v37 = vld [vmem:[#allocation5 + $0x498] sm:$0xff]  ;;  %v522_v2 = vld [vmem:[#allocation5 + $0xe60] sm:$0xff] }
  0x8b   :  { %776 = vmatpush.msra.mxu0 %v344_v7  ;;  %830 = vmatpush.msrb.mxu2 %v265_v8  ;;  %v345_v38 = vld [vmem:[#allocation5 + $0x8d8] sm:$0xff]  ;;  %v298_v4 = vld [vmem:[#allocation5 + $0x760] sm:$0xff] }
  0x8c   :  { %849 = vmatpush.msrb.mxu3 %v401_v9  ;;  %808 = vmatpush.msrb.mxu1 %v153_v10  ;;  %v505_v40 = vld [vmem:[#allocation5 + $0xdd8] sm:$0xff]  ;;  %v410_v5 = vld [vmem:[#allocation5 + $0xae0] sm:$0xff] }
  0x8d   :  { %777 = vmatpush.msra.mxu0 %v336_v11  ;;  %831 = vmatpush.msrb.mxu2 %v257_v12  ;;  %v89_v41 = vld [vmem:[#allocation5 + $0xd8] sm:$0xff]  ;;  %v514_v6 = vld [vmem:[#allocation5 + $0xe20] sm:$0xff] }
  0x8e   :  { %850 = vmatpush.msrb.mxu3 %v393_v13  ;;  %809 = vmatpush.msrb.mxu1 %v145_v14  ;;  %v201_v42 = vld [vmem:[#allocation5 + $0x458] sm:$0xff]  ;;  %v186_v8 = vld [vmem:[#allocation5 + $0x3e0] sm:$0xff] }
  0x8f   :  { %778 = vmatpush.msra.mxu0 %v328_v15  ;;  %832 = vmatpush.msrb.mxu2 %v249_v16  ;;  %v337_v43 = vld [vmem:[#allocation5 + $0x898] sm:$0xff]  ;;  %v290_v9 = vld [vmem:[#allocation5 + $0x720] sm:$0xff] }
  0x90   :  { %851 = vmatpush.msrb.mxu3 %v385_v17  ;;  %810 = vmatpush.msrb.mxu1 %v137_v18  ;;  %v497_v44 = vld [vmem:[#allocation5 + $0xd98] sm:$0xff]  ;;  %v402_v10 = vld [vmem:[#allocation5 + $0xaa0] sm:$0xff] }
  0x91   :  { %779 = vmatpush.msra.mxu0 %v320_v19  ;;  %833 = vmatpush.msrb.mxu2 %v241_v20  ;;  %v81_v47 = vld [vmem:[#allocation5 + $0x98] sm:$0xff]  ;;  %v506_v11 = vld [vmem:[#allocation5 + $0xde0] sm:$0xff] }
  0x92   :  { %852 = vmatpush.msrb.mxu3 %v377_v21  ;;  %811 = vmatpush.msrb.mxu1 %v129_v22  ;;  %v193_v48 = vld [vmem:[#allocation5 + $0x418] sm:$0xff]  ;;  %v178_v12 = vld [vmem:[#allocation5 + $0x3a0] sm:$0xff] }
  0x93   :  { %868 = vmatpush.msrb.mxu0 %v537_v23  ;;  %834 = vmatpush.msrb.mxu2 %v233_v24  ;;  %v329_v49 = vld [vmem:[#allocation5 + $0x858] sm:$0xff]  ;;  %v282_v13 = vld [vmem:[#allocation5 + $0x6e0] sm:$0xff] }
  0x94   :  { %853 = vmatpush.msrb.mxu3 %v369_v25  ;;  %812 = vmatpush.msrb.mxu1 %v121_v26  ;;  %v489_v50 = vld [vmem:[#allocation5 + $0xd58] sm:$0xff]  ;;  %v394_v14 = vld [vmem:[#allocation5 + $0xa60] sm:$0xff] }
  0x95   :  { %869 = vmatpush.msrb.mxu0 %v529_v27  ;;  %835 = vmatpush.msrb.mxu2 %v225_v28  ;;  %v73_v53 = vld [vmem:[#allocation5 + $0x58] sm:$0xff]  ;;  %v498_v15 = vld [vmem:[#allocation5 + $0xda0] sm:$0xff] }
  0x96   :  { %854 = vmatpush.msrb.mxu3 %v361_v29  ;;  %813 = vmatpush.msrb.mxu1 %v113_v30  ;;  %v321_v54 = vld [vmem:[#allocation5 + $0x818] sm:$0xff]  ;;  %v170_v16 = vld [vmem:[#allocation5 + $0x360] sm:$0xff] }
  0x97   :  { %870 = vmatpush.msrb.mxu0 %v521_v31  ;;  %740 = vmatmul.f32.vlgmr.msra.gmra.mxu2 %v1396_v45  ;;  %v481_v55 = vld [vmem:[#allocation5 + $0xd18] sm:$0xff]  ;;  %v274_v17 = vld [vmem:[#allocation5 + $0x6a0] sm:$0xff] }
  0x98   :  { %855 = vmatpush.msrb.mxu3 %v353_v32  ;;  %814 = vmatpush.msrb.mxu1 %v105_v33  ;;  %v65_v58 = vld [vmem:[#allocation5 + $0x18] sm:$0xff]  ;;  %v386_v18 = vld [vmem:[#allocation5 + $0xa20] sm:$0xff] }
  0x99   :  { %836 = vmatpush.msrb.mxu2 %v217_v34  ;;  %871 = vmatpush.msrb.mxu0 %v513_v35  ;;  %v473_v59 = vld [vmem:[#allocation5 + $0xcd8] sm:$0xff]  ;;  %v490_v19 = vld [vmem:[#allocation5 + $0xd60] sm:$0xff] }
  0x9a   :  { %760 = vmatmul.f32.vlgmr.msra.gmra.mxu3 %v1403_v52  ;;  %815 = vmatpush.msrb.mxu1 %v97_v36  ;;  %v465_v63 = vld [vmem:[#allocation5 + $0xc98] sm:$0xff]  ;;  %v162_v20 = vld [vmem:[#allocation5 + $0x320] sm:$0xff] }
  0x9b   :  { %837 = vmatpush.msrb.mxu2 %v209_v37  ;;  %856 = vmatpush.msrb.mxu3 %v345_v38  ;;  %v457_v3 = vld [vmem:[#allocation5 + $0xc58] sm:$0xff]  ;;  %v266_v21 = vld [vmem:[#allocation5 + $0x660] sm:$0xff] }
  0x9c   :  { %872 = vmatpush.msrb.mxu0 %v505_v40  ;;  %816 = vmatpush.msrb.mxu1 %v89_v41  ;;  %v449_v7 = vld [vmem:[#allocation5 + $0xc18] sm:$0xff]  ;;  %v378_v22 = vld [vmem:[#allocation5 + $0x9e0] sm:$0xff] }
  0x9d   :  { %838 = vmatpush.msrb.mxu2 %v201_v42  ;;  %857 = vmatpush.msrb.mxu3 %v337_v43  ;;  %v482_v23 = vld [vmem:[#allocation5 + $0xd20] sm:$0xff]  ;;  %v187_v43 = vld [vmem:[#allocation5 + $0x3e8] sm:$0xff] }
  0x9e   :  { %873 = vmatpush.msrb.mxu0 %v497_v44  ;;  %817 = vmatpush.msrb.mxu1 %v81_v47  ;;  %v154_v24 = vld [vmem:[#allocation5 + $0x2e0] sm:$0xff] }
  0x9f   :  { %839 = vmatpush.msrb.mxu2 %v193_v48  ;;  %858 = vmatpush.msrb.mxu3 %v329_v49  ;;  %v258_v25 = vld [vmem:[#allocation5 + $0x620] sm:$0xff]  ;;  %v179_v48 = vld [vmem:[#allocation5 + $0x3a8] sm:$0xff] }
  0xa0   :  { %874 = vmatpush.msrb.mxu0 %v489_v50  ;;  %818 = vmatpush.msrb.mxu1 %v73_v53  ;;  %v370_v26 = vld [vmem:[#allocation5 + $0x9a0] sm:$0xff] }
  0xa1   :  { %924 = vmatpush.msra.mxu2 %v442_v51  ;;  %859 = vmatpush.msrb.mxu3 %v321_v54  ;;  %v474_v27 = vld [vmem:[#allocation5 + $0xce0] sm:$0xff] }
  0xa2   :  { %875 = vmatpush.msrb.mxu0 %v481_v55  ;;  %819 = vmatpush.msrb.mxu1 %v65_v58  ;;  %v146_v28 = vld [vmem:[#allocation5 + $0x2a0] sm:$0xff]  ;;  %v155_v58 = vld [vmem:[#allocation5 + $0x2e8] sm:$0xff] }
  0xa3   :  { %780 = vmatmul.f32.vlgmr.msra.gmra.mxu0 %v1393_v39  ;;  %925 = vmatpush.msra.mxu2 %v434_v56  ;;  %v250_v29 = vld [vmem:[#allocation5 + $0x5e0] sm:$0xff]  ;;  %v163_v56 = vld [vmem:[#allocation5 + $0x328] sm:$0xff] }
  0xa4   :  { %948 = vmatpush.msra.mxu3 %v538_v57  ;;  %876 = vmatpush.msrb.mxu0 %v473_v59  ;;  %v362_v30 = vld [vmem:[#allocation5 + $0x960] sm:$0xff]  ;;  %v531_v59 = vld [vmem:[#allocation5 + $0xea8] sm:$0xff] }
  0xa5   :  { %1240 = vmatmul.msk.f32.vlgmr.msra.gmra.mxu1 %vm560_vm0, %v1398_v46  ;;  %926 = vmatpush.msra.mxu2 %v426_v61  ;;  %v466_v31 = vld [vmem:[#allocation5 + $0xca0] sm:$0xff]  ;;  %v147_v61 = vld [vmem:[#allocation5 + $0x2a8] sm:$0xff] }
  0xa6   :  { %904 = vmatpush.msra.mxu1 %v314_v60  ;;  %949 = vmatpush.msra.mxu3 %v530_v62  ;;  %v138_v32 = vld [vmem:[#allocation5 + $0x260] sm:$0xff]  ;;  %v443_v62 = vld [vmem:[#allocation5 + $0xbe8] sm:$0xff] }
  0xa7   :  { %877 = vmatpush.msrb.mxu0 %v465_v63  ;;  %927 = vmatpush.msra.mxu2 %v418_v1  ;;  %v242_v33 = vld [vmem:[#allocation5 + $0x5a0] sm:$0xff]  ;;  %v523_v63 = vld [vmem:[#allocation5 + $0xe68] sm:$0xff] }
  0xa8   :  { %905 = vmatpush.msra.mxu1 %v306_v0  ;;  %950 = vmatpush.msra.mxu3 %v522_v2  ;;  %v354_v34 = vld [vmem:[#allocation5 + $0x920] sm:$0xff]  ;;  %v139_v1 = vld [vmem:[#allocation5 + $0x268] sm:$0xff] }
  0xa9   :  { %878 = vmatpush.msrb.mxu0 %v457_v3  ;;  %928 = vmatpush.msra.mxu2 %v410_v5  ;;  %v458_v35 = vld [vmem:[#allocation5 + $0xc60] sm:$0xff]  ;;  %v435_v2 = vld [vmem:[#allocation5 + $0xba8] sm:$0xff] }
  0xaa   :  { %906 = vmatpush.msra.mxu1 %v298_v4  ;;  %951 = vmatpush.msra.mxu3 %v514_v6  ;;  %v130_v36 = vld [vmem:[#allocation5 + $0x220] sm:$0xff]  ;;  %v515_v3 = vld [vmem:[#allocation5 + $0xe28] sm:$0xff] }
  0xab   :  { %879 = vmatpush.msrb.mxu0 %v449_v7  ;;  %929 = vmatpush.msra.mxu2 %v402_v10  ;;  %v234_v37 = vld [vmem:[#allocation5 + $0x560] sm:$0xff]  ;;  %v131_v5 = vld [vmem:[#allocation5 + $0x228] sm:$0xff] }
  0xac   :  { %907 = vmatpush.msra.mxu1 %v290_v9  ;;  %952 = vmatpush.msra.mxu3 %v506_v11  ;;  %v346_v38 = vld [vmem:[#allocation5 + $0x8e0] sm:$0xff]  ;;  %v427_v6 = vld [vmem:[#allocation5 + $0xb68] sm:$0xff] }
  0xad   :  { %884 = vmatpush.msra.mxu0 %v186_v8  ;;  %930 = vmatpush.msra.mxu2 %v394_v14  ;;  %v450_v40 = vld [vmem:[#allocation5 + $0xc20] sm:$0xff]  ;;  %v123_v8 = vld [vmem:[#allocation5 + $0x1e8] sm:$0xff] }
  0xae   :  { %908 = vmatpush.msra.mxu1 %v282_v13  ;;  %953 = vmatpush.msra.mxu3 %v498_v15  ;;  %v122_v41 = vld [vmem:[#allocation5 + $0x1e0] sm:$0xff]  ;;  %v315_v9 = vld [vmem:[#allocation5 + $0x7e8] sm:$0xff] }
  0xaf   :  { %885 = vmatpush.msra.mxu0 %v178_v12  ;;  %931 = vmatpush.msra.mxu2 %v386_v18  ;;  %v226_v42 = vld [vmem:[#allocation5 + $0x520] sm:$0xff]  ;;  %v419_v10 = vld [vmem:[#allocation5 + $0xb28] sm:$0xff] }
  0xb0   :  { %909 = vmatpush.msra.mxu1 %v274_v17  ;;  %954 = vmatpush.msra.mxu3 %v490_v19  ;;  %v338_v44 = vld [vmem:[#allocation5 + $0x8a0] sm:$0xff]  ;;  %v499_v11 = vld [vmem:[#allocation5 + $0xda8] sm:$0xff] }
  0xb1   :  { %886 = vmatpush.msra.mxu0 %v170_v16  ;;  %932 = vmatpush.msra.mxu2 %v378_v22  ;;  %v114_v47 = vld [vmem:[#allocation5 + $0x1a0] sm:$0xff]  ;;  %v115_v12 = vld [vmem:[#allocation5 + $0x1a8] sm:$0xff] }
  0xb2   :  { %910 = vmatpush.msra.mxu1 %v266_v21  ;;  %955 = vmatpush.msra.mxu3 %v482_v23  ;;  %v218_v49 = vld [vmem:[#allocation5 + $0x4e0] sm:$0xff]  ;;  %v307_v13 = vld [vmem:[#allocation5 + $0x7a8] sm:$0xff] }
  0xb3   :  { %887 = vmatpush.msra.mxu0 %v162_v20  ;;  %933 = vmatpush.msra.mxu2 %v370_v26  ;;  %v330_v50 = vld [vmem:[#allocation5 + $0x860] sm:$0xff]  ;;  %v411_v14 = vld [vmem:[#allocation5 + $0xae8] sm:$0xff] }
  0xb4   :  { %911 = vmatpush.msra.mxu1 %v258_v25  ;;  %956 = vmatpush.msra.mxu3 %v474_v27  ;;  %v106_v51 = vld [vmem:[#allocation5 + $0x160] sm:$0xff]  ;;  %v491_v15 = vld [vmem:[#allocation5 + $0xd68] sm:$0xff] }
  0xb5   :  { %888 = vmatpush.msra.mxu0 %v154_v24  ;;  %934 = vmatpush.msra.mxu2 %v362_v30  ;;  %v210_v53 = vld [vmem:[#allocation5 + $0x4a0] sm:$0xff]  ;;  %v107_v16 = vld [vmem:[#allocation5 + $0x168] sm:$0xff] }
  0xb6   :  { %912 = vmatpush.msra.mxu1 %v250_v29  ;;  %957 = vmatpush.msra.mxu3 %v466_v31  ;;  %v322_v54 = vld [vmem:[#allocation5 + $0x820] sm:$0xff]  ;;  %v299_v17 = vld [vmem:[#allocation5 + $0x768] sm:$0xff] }
  0xb7   :  { %889 = vmatpush.msra.mxu0 %v146_v28  ;;  %935 = vmatpush.msra.mxu2 %v354_v34  ;;  %v98_v55 = vld [vmem:[#allocation5 + $0x120] sm:$0xff]  ;;  %v403_v18 = vld [vmem:[#allocation5 + $0xaa8] sm:$0xff] }
  0xb8   :  { %913 = vmatpush.msra.mxu1 %v242_v33  ;;  %958 = vmatpush.msra.mxu3 %v458_v35  ;;  %v202_v57 = vld [vmem:[#allocation5 + $0x460] sm:$0xff]  ;;  %v483_v19 = vld [vmem:[#allocation5 + $0xd28] sm:$0xff] }
  0xb9   :  { %890 = vmatpush.msra.mxu0 %v138_v32  ;;  %840 = vmatmul.f32.vlgmr.msrb.gmra.mxu2 %v1403_v52  ;;  %v171_v52 = vld [vmem:[#allocation5 + $0x368] sm:$0xff]  ;;  %v194_v60 = vld [vmem:[#allocation5 + $0x420] sm:$0xff] }
  0xba   :  { %914 = vmatpush.msra.mxu1 %v234_v37  ;;  %936 = vmatpush.msra.mxu2 %v346_v38  ;;  %v82_v0 = vld [vmem:[#allocation5 + $0xa0] sm:$0xff]  ;;  %v99_v20 = vld [vmem:[#allocation5 + $0x128] sm:$0xff] }
  0xbb   :  { %891 = vmatpush.msra.mxu0 %v130_v36  ;;  %959 = vmatpush.msra.mxu3 %v450_v40  ;;  %v74_v4 = vld [vmem:[#allocation5 + $0x60] sm:$0xff]  ;;  %v291_v21 = vld [vmem:[#allocation5 + $0x728] sm:$0xff]  ;;  %v188_v40 = vld [vmem:[#allocation5 + $0x3f0] sm:$0xff] }
  0xbc   :  { %860 = vmatmul.f32.vlgmr.msrb.gmra.mxu3 %v1393_v39  ;;  %915 = vmatpush.msra.mxu1 %v226_v42  ;;  %v539_v39 = vld [vmem:[#allocation5 + $0xee8] sm:$0xff]  ;;  %v66_v7 = vld [vmem:[#allocation5 + $0x20] sm:$0xff] }
  0xbd   :  { %892 = vmatpush.msra.mxu0 %v122_v41  ;;  %964 = vmatpush.msrb.mxu3 %v187_v43  ;;  %v395_v22 = vld [vmem:[#allocation5 + $0xa68] sm:$0xff]  ;;  %v1421_v30 = vld [vmem:[#allocation7] sm:$0xff] }
  0xbe   :  { %937 = vmatpush.msra.mxu2 %v338_v44  ;;  %820 = vmatmul.f32.vlgmr.msrb.gmra.mxu1 %v1396_v45  ;;  %v90_v45 = vld [vmem:[#allocation5 + $0xe0] sm:$0xff]  ;;  %v475_v23 = vld [vmem:[#allocation5 + $0xce8] sm:$0xff]  ;;  %v544_v37 = vperm.slane %v1421_v30, 0  ;;  %v1424_v44 = vld [vmem:[#allocation2 + $0x10] sm:$0xff] }
  0xbf   :  { %893 = vmatpush.msra.mxu0 %v114_v47  ;;  %965 = vmatpush.msrb.mxu3 %v179_v48  ;;  %v91_v24 = vld [vmem:[#allocation5 + $0xe8] sm:$0xff]  ;;  %v180_v47 = vld [vmem:[#allocation5 + $0x3b0] sm:$0xff] }
  0xc0   :  { %916 = vmatpush.msra.mxu1 %v218_v49  ;;  %938 = vmatpush.msra.mxu2 %v330_v50  ;;  %v283_v25 = vld [vmem:[#allocation5 + $0x6e8] sm:$0xff]  ;;  %v316_v49 = vld [vmem:[#allocation5 + $0x7f0] sm:$0xff] }
  0xc1   :  { %894 = vmatpush.msra.mxu0 %v106_v51  ;;  %966 = vmatpush.msrb.mxu3 %v171_v52  ;;  %v387_v26 = vld [vmem:[#allocation5 + $0xa28] sm:$0xff]  ;;  %v1427_v51 = vld [vmem:[#allocation2] sm:$0xff] }
  0xc2   :  { %917 = vmatpush.msra.mxu1 %v210_v53  ;;  %939 = vmatpush.msra.mxu2 %v322_v54  ;;  %v467_v27 = vld [vmem:[#allocation5 + $0xca8] sm:$0xff]  ;;  %v172_v53 = vld [vmem:[#allocation5 + $0x370] sm:$0xff]  ;;  %v1430_v54 = vld [vmem:[#allocation2 + $0x18] sm:$0xff] }
  0xc3   :  { %895 = vmatpush.msra.mxu0 %v98_v55  ;;  %967 = vmatpush.msrb.mxu3 %v163_v56  ;;  %v83_v28 = vld [vmem:[#allocation5 + $0xa8] sm:$0xff]  ;;  %v308_v55 = vld [vmem:[#allocation5 + $0x7b0] sm:$0xff] }
  0xc4   :  { %1028 = vmatpush.msrb.mxu2 %v539_v39  ;;  %918 = vmatpush.msra.mxu1 %v202_v57  ;;  %v275_v29 = vld [vmem:[#allocation5 + $0x6a8] sm:$0xff] }
  0xc5   :  { %1241 = vmatmul.msk.f32.vlgmr.msrb.gmra.mxu0 %vm560_vm0, %v1398_v46  ;;  %968 = vmatpush.msrb.mxu3 %v155_v58  ;;  %v507_v46 = vld [vmem:[#allocation5 + $0xde8] sm:$0xff] }
  0xc6   :  { %1029 = vmatpush.msrb.mxu2 %v531_v59  ;;  %896 = vmatpush.msra.mxu0 %v90_v45  ;;  %v379_v31 = vld [vmem:[#allocation5 + $0x9e8] sm:$0xff]  ;;  %v164_v45 = vld [vmem:[#allocation5 + $0x330] sm:$0xff] }
  0xc7   :  { %919 = vmatpush.msra.mxu1 %v194_v60  ;;  %969 = vmatpush.msrb.mxu3 %v147_v61  ;;  %v459_v32 = vld [vmem:[#allocation5 + $0xc68] sm:$0xff]  ;;  %v300_v60 = vld [vmem:[#allocation5 + $0x770] sm:$0xff] }
  0xc8   :  { %1030 = vmatpush.msrb.mxu2 %v523_v63  ;;  %897 = vmatpush.msra.mxu0 %v82_v0  ;;  %v75_v33 = vld [vmem:[#allocation5 + $0x68] sm:$0xff] }
  0xc9   :  { %1004 = vmatpush.msrb.mxu1 %v443_v62  ;;  %970 = vmatpush.msrb.mxu3 %v139_v1  ;;  %v267_v34 = vld [vmem:[#allocation5 + $0x668] sm:$0xff]  ;;  %v641_v1 = vpop.f32.mrf.mxu3 }
  0xca   :  { %1031 = vmatpush.msrb.mxu2 %v515_v3  ;;  %898 = vmatpush.msra.mxu0 %v74_v4  ;;  %v371_v35 = vld [vmem:[#allocation5 + $0x9a8] sm:$0xff]  ;;  %v292_v3 = vld [vmem:[#allocation5 + $0x730] sm:$0xff] }
  0xcb   :  { %1005 = vmatpush.msrb.mxu1 %v435_v2  ;;  %971 = vmatpush.msrb.mxu3 %v131_v5  ;;  %v451_v36 = vld [vmem:[#allocation5 + $0xc28] sm:$0xff]  ;;  %v156_v2 = vld [vmem:[#allocation5 + $0x2f0] sm:$0xff] }
  0xcc   :  { %1032 = vmatpush.msrb.mxu2 %v507_v46  ;;  %899 = vmatpush.msra.mxu0 %v66_v7  ;;  %v67_v38 = vld [vmem:[#allocation5 + $0x28] sm:$0xff]  ;;  %v148_v46 = vld [vmem:[#allocation5 + $0x2b0] sm:$0xff] }
  0xcd   :  { %1006 = vmatpush.msrb.mxu1 %v427_v6  ;;  %972 = vmatpush.msrb.mxu3 %v123_v8  ;;  %v259_v41 = vld [vmem:[#allocation5 + $0x628] sm:$0xff]  ;;  %v284_v7 = vld [vmem:[#allocation5 + $0x6f0] sm:$0xff] }
  0xce   :  { %984 = vmatpush.msrb.mxu0 %v315_v9  ;;  %1033 = vmatpush.msrb.mxu2 %v499_v11  ;;  %v363_v42 = vld [vmem:[#allocation5 + $0x968] sm:$0xff]  ;;  %v140_v11 = vld [vmem:[#allocation5 + $0x270] sm:$0xff] }
  0xcf   :  { %1007 = vmatpush.msrb.mxu1 %v419_v10  ;;  %973 = vmatpush.msrb.mxu3 %v115_v12  ;;  %v251_v50 = vld [vmem:[#allocation5 + $0x5e8] sm:$0xff]  ;;  %v276_v12 = vld [vmem:[#allocation5 + $0x6b0] sm:$0xff] }
  0xd0   :  { %985 = vmatpush.msrb.mxu0 %v307_v13  ;;  %1034 = vmatpush.msrb.mxu2 %v491_v15  ;;  %v355_v52 = vld [vmem:[#allocation5 + $0x928] sm:$0xff]  ;;  %v540_v13 = vld [vmem:[#allocation5 + $0xef0] sm:$0xff] }
  0xd1   :  { %1008 = vmatpush.msrb.mxu1 %v411_v14  ;;  %974 = vmatpush.msrb.mxu3 %v107_v16  ;;  %v243_v57 = vld [vmem:[#allocation5 + $0x5a8] sm:$0xff]  ;;  %v132_v15 = vld [vmem:[#allocation5 + $0x230] sm:$0xff] }
  0xd2   :  { %986 = vmatpush.msrb.mxu0 %v299_v17  ;;  %1035 = vmatpush.msrb.mxu2 %v483_v19  ;;  %v347_v58 = vld [vmem:[#allocation5 + $0x8e8] sm:$0xff]  ;;  %v268_v16 = vld [vmem:[#allocation5 + $0x670] sm:$0xff] }
  0xd3   :  { %1009 = vmatpush.msrb.mxu1 %v403_v18  ;;  %975 = vmatpush.msrb.mxu3 %v99_v20  ;;  %v1434_v61 = vld [vmem:[#allocation2 + $0x8] sm:$0xff]  ;;  %v532_v17 = vld [vmem:[#allocation5 + $0xeb0] sm:$0xff] }
  0xd4   :  { %987 = vmatpush.msrb.mxu0 %v291_v21  ;;  %1036 = vmatpush.msrb.mxu2 %v475_v23  ;;  %v235_v62 = vld [vmem:[#allocation5 + $0x568] sm:$0xff]  ;;  %v124_v19 = vld [vmem:[#allocation5 + $0x1f0] sm:$0xff] }
  0xd5   :  { %1010 = vmatpush.msrb.mxu1 %v395_v22  ;;  %976 = vmatpush.msrb.mxu3 %v91_v24  ;;  %v339_v63 = vld [vmem:[#allocation5 + $0x8a8] sm:$0xff]  ;;  %v260_v20 = vld [vmem:[#allocation5 + $0x630] sm:$0xff] }
  0xd6   :  { %988 = vmatpush.msrb.mxu0 %v283_v25  ;;  %1037 = vmatpush.msrb.mxu2 %v467_v27  ;;  %v227_v4 = vld [vmem:[#allocation5 + $0x528] sm:$0xff]  ;;  %v524_v21 = vld [vmem:[#allocation5 + $0xe70] sm:$0xff] }
  0xd7   :  { %1011 = vmatpush.msrb.mxu1 %v387_v26  ;;  %977 = vmatpush.msrb.mxu3 %v83_v28  ;;  %v331_v5 = vld [vmem:[#allocation5 + $0x868] sm:$0xff]  ;;  %v116_v23 = vld [vmem:[#allocation5 + $0x1b0] sm:$0xff] }
  0xd8   :  { %989 = vmatpush.msrb.mxu0 %v275_v29  ;;  %1038 = vmatpush.msrb.mxu2 %v459_v32  ;;  %v219_v8 = vld [vmem:[#allocation5 + $0x4e8] sm:$0xff]  ;;  %v252_v24 = vld [vmem:[#allocation5 + $0x5f0] sm:$0xff] }
  0xd9   :  { %1012 = vmatpush.msrb.mxu1 %v379_v31  ;;  %978 = vmatpush.msrb.mxu3 %v75_v33  ;;  %v323_v9 = vld [vmem:[#allocation5 + $0x828] sm:$0xff]  ;;  %v444_v25 = vld [vmem:[#allocation5 + $0xbf0] sm:$0xff] }
  0xda   :  { %990 = vmatpush.msrb.mxu0 %v267_v34  ;;  %1039 = vmatpush.msrb.mxu2 %v451_v36  ;;  %v211_v14 = vld [vmem:[#allocation5 + $0x4a8] sm:$0xff]  ;;  %v516_v26 = vld [vmem:[#allocation5 + $0xe30] sm:$0xff] }
  0xdb   :  { %1013 = vmatpush.msrb.mxu1 %v371_v35  ;;  %v581_v43 = vpop.f32.mrf.mxu0  ;;  %940 = vmatmul.f32.vlgmr.msra.gmra.mxu2 %v1424_v44  ;;  %v203_v18 = vld [vmem:[#allocation5 + $0x468] sm:$0xff]  ;;  %v108_v27 = vld [vmem:[#allocation5 + $0x170] sm:$0xff] }
  0xdc   :  { %979 = vmatpush.msrb.mxu3 %v67_v38  ;;  %v582_v48 = vadd.f32 %v581_v43, %v544_v37  ;;  %1044 = vmatpush.msra.mxu2 %v188_v40  ;;  %v195_v22 = vld [vmem:[#allocation5 + $0x428] sm:$0xff]  ;;  %v244_v28 = vld [vmem:[#allocation5 + $0x5b0] sm:$0xff] }
  0xdd   :  { %991 = vmatpush.msrb.mxu0 %v259_v41  ;;  %1014 = vmatpush.msrb.mxu1 %v363_v42  ;;  %v621_v39 = vpop.f32.mrf.mxu2  ;;  %v436_v29 = vld [vmem:[#allocation5 + $0xbb0] sm:$0xff] }
  0xde   :  { %900 = vmatmul.f32.vlgmr.msra.gmra.mxu0 %v1427_v51  ;;  %1242 = vmatmul.msk.f32.vlgmr.msra.gmra.mxu3 %vm560_vm0, %v1430_v54  ;;  %v601_v56 = vpop.f32.mrf.mxu1  ;;  %v508_v31 = vld [vmem:[#allocation5 + $0xdf0] sm:$0xff] }
  0xdf   :  { %1045 = vmatpush.msra.mxu2 %v180_v47  ;;  %1064 = vmatpush.msra.mxu3 %v316_v49  ;;  %v602_v59 = vadd.f32 %v601_v56, %v582_v48  ;;  %v100_v32 = vld [vmem:[#allocation5 + $0x130] sm:$0xff] }
  0xe0   :  { %992 = vmatpush.msrb.mxu0 %v251_v50  ;;  %1015 = vmatpush.msrb.mxu1 %v355_v52  ;;  %v236_v33 = vld [vmem:[#allocation5 + $0x570] sm:$0xff]  ;;  %v545_v52 = vperm.slane %v1421_v30, 1 }
  0xe1   :  { %1046 = vmatpush.msra.mxu2 %v172_v53  ;;  %920 = vmatmul.f32.vlgmr.msra.gmra.mxu1 %v1434_v61  ;;  %v622_v0 = vadd.f32 %v621_v39, %v602_v59  ;;  %v428_v34 = vld [vmem:[#allocation5 + $0xb70] sm:$0xff]  ;;  %v317_v59 = vld [vmem:[#allocation5 + $0x7f8] sm:$0xff] }
  0xe2   :  { %1065 = vmatpush.msra.mxu3 %v308_v55  ;;  %993 = vmatpush.msrb.mxu0 %v243_v57  ;;  %v500_v35 = vld [vmem:[#allocation5 + $0xdb0] sm:$0xff] }
  0xe3   :  { %1016 = vmatpush.msrb.mxu1 %v347_v58  ;;  %1047 = vmatpush.msra.mxu2 %v164_v45  ;;  %v642_v6 = vadd.f32 %v641_v1, %v622_v0  ;;  %v92_v36 = vld [vmem:[#allocation5 + $0xf0] sm:$0xff]  ;;  %v309_v0 = vld [vmem:[#allocation5 + $0x7b8] sm:$0xff] }
  0xe4   :  { %1066 = vmatpush.msra.mxu3 %v300_v60  ;;  %994 = vmatpush.msrb.mxu0 %v235_v62  ;;  %v228_v37 = vld [vmem:[#allocation5 + $0x530] sm:$0xff] }
  0xe5   :  { %1017 = vmatpush.msrb.mxu1 %v339_v63  ;;  %1048 = vmatpush.msra.mxu2 %v156_v2  ;;  %v1204_v10 = vmax.f32 %v642_v6, 0.0  ;;  %v420_v38 = vld [vmem:[#allocation5 + $0xb30] sm:$0xff]  ;;  %v445_v2 = vld [vmem:[#allocation5 + $0xbf8] sm:$0xff] }
  0xe6   :  { %1067 = vmatpush.msra.mxu3 %v292_v3  ;;  %995 = vmatpush.msrb.mxu0 %v227_v4  ;;  %v492_v40 = vld [vmem:[#allocation5 + $0xd70] sm:$0xff]  ;;  %v301_v6 = vld [vmem:[#allocation5 + $0x778] sm:$0xff] }
  0xe7   :  { %1018 = vmatpush.msrb.mxu1 %v331_v5  ;;  %1049 = vmatpush.msra.mxu2 %v148_v46  ;;  %1212 = vst [vmem:[#allocation8] sm:$0xff] %v1204_v10  ;;  %v84_v41 = vld [vmem:[#allocation5 + $0xb0] sm:$0xff]  ;;  %v437_v46 = vld [vmem:[#allocation5 + $0xbb8] sm:$0xff] }
  0xe8   :  { %1068 = vmatpush.msra.mxu3 %v284_v7  ;;  %996 = vmatpush.msrb.mxu0 %v219_v8  ;;  %v220_v42 = vld [vmem:[#allocation5 + $0x4f0] sm:$0xff] }
  0xe9   :  { %1019 = vmatpush.msrb.mxu1 %v323_v9  ;;  %1050 = vmatpush.msra.mxu2 %v140_v11  ;;  %v412_v43 = vld [vmem:[#allocation5 + $0xaf0] sm:$0xff]  ;;  %v189_v9 = vld [vmem:[#allocation5 + $0x3f8] sm:$0xff] }
  0xea   :  { %1069 = vmatpush.msra.mxu3 %v276_v12  ;;  %997 = vmatpush.msrb.mxu0 %v211_v14  ;;  %v484_v47 = vld [vmem:[#allocation5 + $0xd30] sm:$0xff]  ;;  %v293_v12 = vld [vmem:[#allocation5 + $0x738] sm:$0xff] }
  0xeb   :  { %1108 = vmatpush.msra.mxu1 %v540_v13  ;;  %1051 = vmatpush.msra.mxu2 %v132_v15  ;;  %v76_v48 = vld [vmem:[#allocation5 + $0x70] sm:$0xff]  ;;  %v429_v13 = vld [vmem:[#allocation5 + $0xb78] sm:$0xff] }
  0xec   :  { %1070 = vmatpush.msra.mxu3 %v268_v16  ;;  %998 = vmatpush.msrb.mxu0 %v203_v18  ;;  %v212_v49 = vld [vmem:[#allocation5 + $0x4b0] sm:$0xff]  ;;  %v181_v14 = vld [vmem:[#allocation5 + $0x3b8] sm:$0xff] }
  0xed   :  { %1109 = vmatpush.msra.mxu1 %v532_v17  ;;  %1052 = vmatpush.msra.mxu2 %v124_v19  ;;  %v404_v50 = vld [vmem:[#allocation5 + $0xab0] sm:$0xff]  ;;  %v285_v17 = vld [vmem:[#allocation5 + $0x6f8] sm:$0xff] }
  0xee   :  { %1071 = vmatpush.msra.mxu3 %v260_v20  ;;  %999 = vmatpush.msrb.mxu0 %v195_v22  ;;  %v476_v53 = vld [vmem:[#allocation5 + $0xcf0] sm:$0xff]  ;;  %v421_v18 = vld [vmem:[#allocation5 + $0xb38] sm:$0xff] }
  0xef   :  { %1110 = vmatpush.msra.mxu1 %v524_v21  ;;  %1053 = vmatpush.msra.mxu2 %v116_v23  ;;  %v68_v55 = vld [vmem:[#allocation5 + $0x30] sm:$0xff]  ;;  %v173_v19 = vld [vmem:[#allocation5 + $0x378] sm:$0xff] }
  0xf0   :  { %1072 = vmatpush.msra.mxu3 %v252_v24  ;;  %1084 = vmatpush.msra.mxu0 %v444_v25  ;;  %v204_v56 = vld [vmem:[#allocation5 + $0x470] sm:$0xff]  ;;  %v277_v22 = vld [vmem:[#allocation5 + $0x6b8] sm:$0xff] }
  0xf1   :  { %1111 = vmatpush.msra.mxu1 %v516_v26  ;;  %1054 = vmatpush.msra.mxu2 %v108_v27  ;;  %v396_v39 = vld [vmem:[#allocation5 + $0xa70] sm:$0xff]  ;;  %v413_v23 = vld [vmem:[#allocation5 + $0xaf8] sm:$0xff] }
  0xf2   :  { %1073 = vmatpush.msra.mxu3 %v244_v28  ;;  %1085 = vmatpush.msra.mxu0 %v436_v29  ;;  %v468_v57 = vld [vmem:[#allocation5 + $0xcb0] sm:$0xff]  ;;  %v165_v24 = vld [vmem:[#allocation5 + $0x338] sm:$0xff] }
  0xf3   :  { %1112 = vmatpush.msra.mxu1 %v508_v31  ;;  %1055 = vmatpush.msra.mxu2 %v100_v32  ;;  %v196_v45 = vld [vmem:[#allocation5 + $0x430] sm:$0xff]  ;;  %v269_v26 = vld [vmem:[#allocation5 + $0x678] sm:$0xff] }
  0xf4   :  { %1074 = vmatpush.msra.mxu3 %v236_v33  ;;  %1086 = vmatpush.msra.mxu0 %v428_v34  ;;  %v388_v62 = vld [vmem:[#allocation5 + $0xa30] sm:$0xff]  ;;  %v405_v27 = vld [vmem:[#allocation5 + $0xab8] sm:$0xff] }
  0xf5   :  { %1113 = vmatpush.msra.mxu1 %v500_v35  ;;  %1056 = vmatpush.msra.mxu2 %v92_v36  ;;  %v460_v63 = vld [vmem:[#allocation5 + $0xc70] sm:$0xff]  ;;  %v157_v28 = vld [vmem:[#allocation5 + $0x2f8] sm:$0xff] }
  0xf6   :  { %1075 = vmatpush.msra.mxu3 %v228_v37  ;;  %1087 = vmatpush.msra.mxu0 %v420_v38  ;;  %v380_v3 = vld [vmem:[#allocation5 + $0x9f0] sm:$0xff]  ;;  %v261_v31 = vld [vmem:[#allocation5 + $0x638] sm:$0xff] }
  0xf7   :  { %1114 = vmatpush.msra.mxu1 %v492_v40  ;;  %980 = vmatmul.f32.vlgmr.msrb.gmra.mxu3 %v1427_v51  ;;  %v452_v5 = vld [vmem:[#allocation5 + $0xc30] sm:$0xff]  ;;  %v397_v32 = vld [vmem:[#allocation5 + $0xa78] sm:$0xff] }
  0xf8   :  { %1057 = vmatpush.msra.mxu2 %v84_v41  ;;  %1076 = vmatpush.msra.mxu3 %v220_v42  ;;  %v372_v10 = vld [vmem:[#allocation5 + $0x9b0] sm:$0xff]  ;;  %v149_v33 = vld [vmem:[#allocation5 + $0x2b8] sm:$0xff] }
  0xf9   :  { %1088 = vmatpush.msra.mxu0 %v412_v43  ;;  %1115 = vmatpush.msra.mxu1 %v484_v47  ;;  %v364_v15 = vld [vmem:[#allocation5 + $0x970] sm:$0xff]  ;;  %v253_v35 = vld [vmem:[#allocation5 + $0x5f8] sm:$0xff] }
  0xfa   :  { %1058 = vmatpush.msra.mxu2 %v76_v48  ;;  %1077 = vmatpush.msra.mxu3 %v212_v49  ;;  %v661_v58 = vpop.f32.mrf.mxu3  ;;  %v356_v20 = vld [vmem:[#allocation5 + $0x930] sm:$0xff]  ;;  %v141_v36 = vld [vmem:[#allocation5 + $0x278] sm:$0xff] }
  0xfb   :  { %1089 = vmatpush.msra.mxu0 %v404_v50  ;;  %1116 = vmatpush.msra.mxu1 %v476_v53  ;;  %v662_v60 = vadd.f32 %v661_v58, %v545_v52  ;;  %v348_v25 = vld [vmem:[#allocation5 + $0x8f0] sm:$0xff]  ;;  %v389_v37 = vld [vmem:[#allocation5 + $0xa38] sm:$0xff] }
  0xfc   :  { %1059 = vmatpush.msra.mxu2 %v68_v55  ;;  %1078 = vmatpush.msra.mxu3 %v204_v56  ;;  %v340_v29 = vld [vmem:[#allocation5 + $0x8b0] sm:$0xff]  ;;  %v133_v40 = vld [vmem:[#allocation5 + $0x238] sm:$0xff] }
  0xfd   :  { %1090 = vmatpush.msra.mxu0 %v396_v39  ;;  %1117 = vmatpush.msra.mxu1 %v468_v57  ;;  %v681_v1 = vpop.f32.mrf.mxu0  ;;  %v332_v34 = vld [vmem:[#allocation5 + $0x870] sm:$0xff]  ;;  %v245_v41 = vld [vmem:[#allocation5 + $0x5b8] sm:$0xff] }
  0xfe   :  { %1243 = vmatmul.msk.f32.vlgmr.msrb.gmra.mxu2 %vm560_vm0, %v1430_v54  ;;  %1079 = vmatpush.msra.mxu3 %v196_v45  ;;  %v682_v4 = vadd.f32 %v681_v1, %v662_v60  ;;  %v324_v38 = vld [vmem:[#allocation5 + $0x830] sm:$0xff]  ;;  %v381_v42 = vld [vmem:[#allocation5 + $0x9f8] sm:$0xff]  ;;  %v546_v60 = vperm.slane %v1421_v30, 2 }
  0xff   :  { %1144 = vmatpush.msrb.mxu2 %v317_v59  ;;  %1091 = vmatpush.msra.mxu0 %v388_v62  ;;  %v541_v43 = vld [vmem:[#allocation5 + $0xef8] sm:$0xff] }
 0x100   :  { %1118 = vmatpush.msra.mxu1 %v460_v63  ;;  %1000 = vmatmul.f32.vlgmr.msrb.gmra.mxu0 %v1434_v61  ;;  %v701_v7 = vpop.f32.mrf.mxu1  ;;  %v125_v47 = vld [vmem:[#allocation5 + $0x1f8] sm:$0xff] }
 0x101   :  { %1145 = vmatpush.msrb.mxu2 %v309_v0  ;;  %v721_v8 = vpop.f32.mrf.mxu2  ;;  %1164 = vmatpush.msrb.mxu3 %v445_v2  ;;  %v702_v11 = vadd.f32 %v701_v7, %v682_v4  ;;  %v237_v48 = vld [vmem:[#allocation5 + $0x578] sm:$0xff] }
 0x102   :  { %1092 = vmatpush.msra.mxu0 %v380_v3  ;;  %1119 = vmatpush.msra.mxu1 %v452_v5  ;;  %v373_v49 = vld [vmem:[#allocation5 + $0x9b8] sm:$0xff] }
 0x103   :  { %1146 = vmatpush.msrb.mxu2 %v301_v6  ;;  %1020 = vmatmul.f32.vlgmr.msrb.gmra.mxu1 %v1424_v44  ;;  %v722_v16 = vadd.f32 %v721_v8, %v702_v11  ;;  %v533_v50 = vld [vmem:[#allocation5 + $0xeb8] sm:$0xff] }
 0x104   :  { %1165 = vmatpush.msrb.mxu3 %v437_v46  ;;  %1124 = vmatpush.msrb.mxu1 %v189_v9  ;;  %v117_v52 = vld [vmem:[#allocation5 + $0x1b8] sm:$0xff] }
 0x105   :  { %1093 = vmatpush.msra.mxu0 %v372_v10  ;;  %1147 = vmatpush.msrb.mxu2 %v293_v12  ;;  %v1205_v21 = vmax.f32 %v722_v16, 0.0  ;;  %v229_v53 = vld [vmem:[#allocation5 + $0x538] sm:$0xff] }
 0x106   :  { %1166 = vmatpush.msrb.mxu3 %v429_v13  ;;  %1125 = vmatpush.msrb.mxu1 %v181_v14  ;;  %v365_v55 = vld [vmem:[#allocation5 + $0x978] sm:$0xff] }
 0x107   :  { %1094 = vmatpush.msra.mxu0 %v364_v15  ;;  %1148 = vmatpush.msrb.mxu2 %v285_v17  ;;  %1213 = vst [vmem:[#allocation8 + $0x8] sm:$0xff] %v1205_v21  ;;  %v525_v56 = vld [vmem:[#allocation5 + $0xe78] sm:$0xff] }
 0x108   :  { %1167 = vmatpush.msrb.mxu3 %v421_v18  ;;  %1126 = vmatpush.msrb.mxu1 %v173_v19  ;;  %v109_v39 = vld [vmem:[#allocation5 + $0x178] sm:$0xff] }
 0x109   :  { %1095 = vmatpush.msra.mxu0 %v356_v20  ;;  %1149 = vmatpush.msrb.mxu2 %v277_v22  ;;  %v221_v57 = vld [vmem:[#allocation5 + $0x4f8] sm:$0xff] }
 0x10a   :  { %1168 = vmatpush.msrb.mxu3 %v413_v23  ;;  %1127 = vmatpush.msrb.mxu1 %v165_v24  ;;  %v357_v58 = vld [vmem:[#allocation5 + $0x938] sm:$0xff] }
 0x10b   :  { %1096 = vmatpush.msra.mxu0 %v348_v25  ;;  %1150 = vmatpush.msrb.mxu2 %v269_v26  ;;  %v517_v59 = vld [vmem:[#allocation5 + $0xe38] sm:$0xff] }
 0x10c   :  { %1169 = vmatpush.msrb.mxu3 %v405_v27  ;;  %1128 = vmatpush.msrb.mxu1 %v157_v28  ;;  %v101_v45 = vld [vmem:[#allocation5 + $0x138] sm:$0xff] }
 0x10d   :  { %1097 = vmatpush.msra.mxu0 %v340_v29  ;;  %1151 = vmatpush.msrb.mxu2 %v261_v31  ;;  %v213_v62 = vld [vmem:[#allocation5 + $0x4b8] sm:$0xff] }
 0x10e   :  { %1170 = vmatpush.msrb.mxu3 %v397_v32  ;;  %1129 = vmatpush.msrb.mxu1 %v149_v33  ;;  %v349_v63 = vld [vmem:[#allocation5 + $0x8f8] sm:$0xff]  ;;  %v548_v33 = vperm.slane %v1421_v30, 4 }
 0x10f   :  { %1060 = vmatmul.f32.vlgmr.msra.gmra.mxu2 %v1427_v51  ;;  %1098 = vmatpush.msra.mxu0 %v332_v34  ;;  %v509_v0 = vld [vmem:[#allocation5 + $0xdf8] sm:$0xff] }
 0x110   :  { %1152 = vmatpush.msrb.mxu2 %v253_v35  ;;  %1130 = vmatpush.msrb.mxu1 %v141_v36  ;;  %v93_v1 = vld [vmem:[#allocation5 + $0xf8] sm:$0xff] }
 0x111   :  { %1171 = vmatpush.msrb.mxu3 %v389_v37  ;;  %1099 = vmatpush.msra.mxu0 %v324_v38  ;;  %v205_v2 = vld [vmem:[#allocation5 + $0x478] sm:$0xff] }
 0x112   :  { %1080 = vmatmul.f32.vlgmr.msra.gmra.mxu3 %v1434_v61  ;;  %1131 = vmatpush.msrb.mxu1 %v133_v40  ;;  %v341_v4 = vld [vmem:[#allocation5 + $0x8b8] sm:$0xff] }
 0x113   :  { %1153 = vmatpush.msrb.mxu2 %v245_v41  ;;  %1172 = vmatpush.msrb.mxu3 %v381_v42  ;;  %v501_v5 = vld [vmem:[#allocation5 + $0xdb8] sm:$0xff] }
 0x114   :  { %1188 = vmatpush.msrb.mxu0 %v541_v43  ;;  %1132 = vmatpush.msrb.mxu1 %v125_v47  ;;  %v85_v46 = vld [vmem:[#allocation5 + $0xb8] sm:$0xff]  ;;  %v549_v43 = vperm.slane %v1421_v30, 5 }
 0x115   :  { %1154 = vmatpush.msrb.mxu2 %v237_v48  ;;  %1173 = vmatpush.msrb.mxu3 %v373_v49  ;;  %v197_v7 = vld [vmem:[#allocation5 + $0x438] sm:$0xff] }
 0x116   :  { %1189 = vmatpush.msrb.mxu0 %v533_v50  ;;  %1133 = vmatpush.msrb.mxu1 %v117_v52  ;;  %v333_v9 = vld [vmem:[#allocation5 + $0x878] sm:$0xff] }
 0x117   :  { %1155 = vmatpush.msrb.mxu2 %v229_v53  ;;  %1174 = vmatpush.msrb.mxu3 %v365_v55  ;;  %v493_v10 = vld [vmem:[#allocation5 + $0xd78] sm:$0xff] }
 0x118   :  { %1190 = vmatpush.msrb.mxu0 %v525_v56  ;;  %1134 = vmatpush.msrb.mxu1 %v109_v39  ;;  %v77_v12 = vld [vmem:[#allocation5 + $0x78] sm:$0xff] }
 0x119   :  { %1156 = vmatpush.msrb.mxu2 %v221_v57  ;;  %1175 = vmatpush.msrb.mxu3 %v357_v58  ;;  %v325_v13 = vld [vmem:[#allocation5 + $0x838] sm:$0xff]  ;;  %v550_v57 = vperm.slane %v1421_v30, 6 }
 0x11a   :  { %1191 = vmatpush.msrb.mxu0 %v517_v59  ;;  %1135 = vmatpush.msrb.mxu1 %v101_v45  ;;  %v741_v3 = vpop.f32.mrf.mxu2  ;;  %v485_v14 = vld [vmem:[#allocation5 + $0xd38] sm:$0xff] }
 0x11b   :  { %1100 = vmatmul.f32.vlgmr.msra.gmra.mxu0 %v1424_v44  ;;  %1157 = vmatpush.msrb.mxu2 %v213_v62  ;;  %v742_v6 = vadd.f32 %v741_v3, %v546_v60  ;;  %v69_v16 = vld [vmem:[#allocation5 + $0x38] sm:$0xff]  ;;  %v551_v3 = vperm.slane %v1421_v30, 7 }
 0x11c   :  { %1176 = vmatpush.msrb.mxu3 %v349_v63  ;;  %1192 = vmatpush.msrb.mxu0 %v509_v0  ;;  %v477_v18 = vld [vmem:[#allocation5 + $0xcf8] sm:$0xff] }
 0x11d   :  { %1244 = vmatmul.msk.f32.vlgmr.msra.gmra.mxu1 %vm560_vm0, %v1430_v54  ;;  %v761_v8 = vpop.f32.mrf.mxu3  ;;  %1158 = vmatpush.msrb.mxu2 %v205_v2  ;;  %v469_v21 = vld [vmem:[#allocation5 + $0xcb8] sm:$0xff] }
 0x11e   :  { %1136 = vmatpush.msrb.mxu1 %v93_v1  ;;  %v762_v11 = vadd.f32 %v761_v8, %v742_v6  ;;  %1177 = vmatpush.msrb.mxu3 %v341_v4  ;;  %v461_v23 = vld [vmem:[#allocation5 + $0xc78] sm:$0xff] }
 0x11f   :  { %1193 = vmatpush.msrb.mxu0 %v501_v5  ;;  %1159 = vmatpush.msrb.mxu2 %v197_v7  ;;  %v453_v24 = vld [vmem:[#allocation5 + $0xc38] sm:$0xff] }
 0x120   :  { %1137 = vmatpush.msrb.mxu1 %v85_v46  ;;  %v781_v15 = vpop.f32.mrf.mxu0  ;;  %1178 = vmatpush.msrb.mxu3 %v333_v9 }
 0x121   :  { %1194 = vmatpush.msrb.mxu0 %v493_v10  ;;  %v782_v17 = vadd.f32 %v781_v15, %v762_v11  ;;  %1160 = vmatmul.f32.vlgmr.msrb.gmra.mxu2 %v1434_v61  ;;  %v547_v61 = vperm.slane %v1421_v30, 3 }
 0x122   :  { %1138 = vmatpush.msrb.mxu1 %v77_v12  ;;  %v801_v19 = vpop.f32.mrf.mxu1  ;;  %1179 = vmatpush.msrb.mxu3 %v325_v13 }
 0x123   :  { %1195 = vmatpush.msrb.mxu0 %v485_v14  ;;  %v802_v20 = vadd.f32 %v801_v19, %v782_v17  ;;  %1180 = vmatmul.f32.vlgmr.msrb.gmra.mxu3 %v1424_v44 }
 0x124   :  { %1139 = vmatpush.msrb.mxu1 %v69_v16 }
 0x125   :  { %1196 = vmatpush.msrb.mxu0 %v477_v18  ;;  %1140 = vmatmul.f32.vlgmr.msrb.gmra.mxu1 %v1427_v51  ;;  %v1206_v22 = vmax.f32 %v802_v20, 0.0 }
 0x127   :  { %1197 = vmatpush.msrb.mxu0 %v469_v21  ;;  %1214 = vst [vmem:[#allocation8 + $0x10] sm:$0xff] %v1206_v22 }
 0x129   :  { %1198 = vmatpush.msrb.mxu0 %v461_v23 }
 0x12b   :  { %1199 = vmatpush.msrb.mxu0 %v453_v24 }
 0x12c   :  { %1245 = vmatmul.msk.f32.vlgmr.msrb.gmra.mxu0 %vm560_vm0, %v1430_v54 }
 0x13b   :  { %v821_v25 = vpop.f32.mrf.mxu1 }
 0x13c   :  { %v822_v26 = vadd.f32 %v821_v25, %v547_v61  ;;  %v841_v44 = vpop.f32.mrf.mxu2 }
 0x13e   :  { %v842_v27 = vadd.f32 %v841_v44, %v822_v26 }
 0x13f   :  { %v861_v28 = vpop.f32.mrf.mxu3 }
 0x140   :  { %v862_v29 = vadd.f32 %v861_v28, %v842_v27 }
 0x142   :  { %v881_v31 = vpop.f32.mrf.mxu0 }
 0x143   :  { %v882_v51 = vadd.f32 %v881_v31, %v862_v29 }
 0x145   :  { %v1207_v32 = vmax.f32 %v882_v51, 0.0 }
 0x147   :  { %1215 = vst [vmem:[#allocation8 + $0x18] sm:$0xff] %v1207_v32 }
 0x15b   :  { %v901_v34 = vpop.f32.mrf.mxu0 }
 0x15c   :  { %v902_v35 = vadd.f32 %v901_v34, %v548_v33 }
 0x15e   :  { %v921_v36 = vpop.f32.mrf.mxu1  ;;  %v941_v37 = vpop.f32.mrf.mxu2 }
 0x15f   :  { %v922_v38 = vadd.f32 %v921_v36, %v902_v35 }
 0x161   :  { %v942_v54 = vadd.f32 %v941_v37, %v922_v38  ;;  %v961_v40 = vpop.f32.mrf.mxu3 }
 0x163   :  { %v962_v41 = vadd.f32 %v961_v40, %v942_v54 }
 0x165   :  { %v1208_v42 = vmax.f32 %v962_v41, 0.0 }
 0x167   :  { %1216 = vst [vmem:[#allocation8 + $0x20] sm:$0xff] %v1208_v42 }
 0x17a   :  { %v981_v47 = vpop.f32.mrf.mxu3 }
 0x17b   :  { %v982_v48 = vadd.f32 %v981_v47, %v549_v43 }
 0x17d   :  { %v1001_v49 = vpop.f32.mrf.mxu0 }
 0x17e   :  { %v1002_v50 = vadd.f32 %v1001_v49, %v982_v48 }
 0x180   :  { %v1021_v52 = vpop.f32.mrf.mxu1 }
 0x181   :  { %v1041_v53 = vpop.f32.mrf.mxu2  ;;  %v1022_v55 = vadd.f32 %v1021_v52, %v1002_v50 }
 0x183   :  { %v1042_v56 = vadd.f32 %v1041_v53, %v1022_v55 }
 0x185   :  { %v1209_v39 = vmax.f32 %v1042_v56, 0.0 }
 0x187   :  { %1217 = vst [vmem:[#allocation8 + $0x28] sm:$0xff] %v1209_v39 }
 0x192   :  { %v1061_v58 = vpop.f32.mrf.mxu2 }
 0x193   :  { %v1062_v59 = vadd.f32 %v1061_v58, %v550_v57 }
 0x195   :  { %v1081_v45 = vpop.f32.mrf.mxu3 }
 0x196   :  { %v1082_v60 = vadd.f32 %v1081_v45, %v1062_v59 }
 0x198   :  { %v1101_v62 = vpop.f32.mrf.mxu0 }
 0x199   :  { %v1102_v63 = vadd.f32 %v1101_v62, %v1082_v60 }
 0x19a   :  { %v1121_v0 = vpop.f32.mrf.mxu1 }
 0x19b   :  { %v1122_v1 = vadd.f32 %v1121_v0, %v1102_v63 }
 0x19d   :  { %v1210_v2 = vmax.f32 %v1122_v1, 0.0 }
 0x19f   :  { %1218 = vst [vmem:[#allocation8 + $0x30] sm:$0xff] %v1210_v2 }
 0x1a2   :  { %v1141_v4 = vpop.f32.mrf.mxu1 }
 0x1a3   :  { %v1142_v5 = vadd.f32 %v1141_v4, %v551_v3 }
 0x1a4   :  { %v1161_v6 = vpop.f32.mrf.mxu2 }
 0x1a5   :  { %v1162_v46 = vadd.f32 %v1161_v6, %v1142_v5 }
 0x1a6   :  { %v1181_v7 = vpop.f32.mrf.mxu3 }
 0x1a7   :  { %v1182_v8 = vadd.f32 %v1181_v7, %v1162_v46 }
 0x1a9   :  { %v1201_v9 = vpop.f32.mrf.mxu0 }
 0x1aa   :  { %v1202_v10 = vadd.f32 %v1201_v9, %v1182_v8 }
 0x1ac   :  { %v1211_v11 = vmax.f32 %v1202_v10, 0.0 }
 0x1ae   :  { %1219 = vst [vmem:[#allocation8 + $0x38] sm:$0xff] %v1211_v11 }
 0x1af   :  { %1230 = dma.vmem_to_hbm [thread:$0]  %s1226_s2, 1024, %s1228_s30, [#allocation4]  }
 0x1b0   :  { %1356 = dma.done.wait [#allocation4], 1024  }
 0x1b1   :  { %1357 = vsyncadd [#allocation4], 4294966272 }
 0x1b2   :  { %1235 = vsyncpa [#allocation3], 1 }
 0x1b3   :  { %1236 = vsyncpa [#allocation6], 1 }
 0x1b4   :  { %1237 = vsyncpa [#allocation4], 1 }

</bundles_post_ra>
